<compile_context>
chip_gen: v5e
topology: v5e:2x2
jax: 0.10.0
libtpu: 0.0.40
codegen_flags: <defaults>
</compile_context>

<pallas_src>
import functools
import math

import jax
import jax.numpy as jnp
from jax.experimental import pallas as pl
from jax.experimental.pallas import tpu as pltpu

# ---------------- model hyper-params (small, forward-consistent) -------------
B = 2          # batch
N = 8          # sequence length (tokens)
D = 32         # input_dim == output_dim (residuals require equality)
HEADS = 4
DIM_HEAD = 8
INNER = HEADS * DIM_HEAD      # 32  (project_out = True since heads != 1)
HIDDEN = 64                   # MLP hidden dim
LN_EPS = 1e-5
SQRT2 = math.sqrt(2.0)


def _layer_norm(x, gamma, beta):
    # Single-pass statistics: var = E[x^2] - E[x]^2  (== torch biased variance)
    mu = jnp.mean(x, axis=-1, keepdims=True)
    ms = jnp.mean(x * x, axis=-1, keepdims=True)
    var = ms - mu * mu
    return (x - mu) * jax.lax.rsqrt(var + LN_EPS) * gamma + beta


def _gelu_exact(x):
    # torch nn.GELU() default = exact erf formulation
    return 0.5 * x * (1.0 + jax.lax.erf(x / SQRT2))


def transformer_block_kernel(x_ref, bias_ref,
                             ln1_g_ref, ln1_b_ref,
                             wq_ref, wk_ref, wv_ref,
                             bq_ref, bk_ref, bv_ref,
                             wo_ref, bo_ref,
                             ln2_g_ref, ln2_b_ref,
                             w1_ref, b1_ref,
                             w2_ref, b2_ref,
                             o_ref,
                             *, heads, dim_head):
    x = x_ref[...]                                  # (B*N, D) flattened tokens
    BN, Dd = x.shape
    scale = dim_head ** (-0.5)

    # ---- PreNorm + Attention (all tokens of all batches in one shot) ----
    xn = _layer_norm(x, ln1_g_ref[...], ln1_b_ref[...])

    q = (jnp.dot(xn, wq_ref[...], preferred_element_type=jnp.float32)
         + bq_ref[...]) * scale                     # fold softmax scale into q
    k = jnp.dot(xn, wk_ref[...], preferred_element_type=jnp.float32) + bk_ref[...]
    v = jnp.dot(xn, wv_ref[...], preferred_element_type=jnp.float32) + bv_ref[...]

    attn_bias = bias_ref[...]                       # (BN, BN): 0 same-batch, -1e30 cross-batch

    # Per-head loop (static, 4 iters). The output projection is accumulated
    # per head, so no concatenate / scratch writes are needed.
    proj = jnp.zeros((BN, Dd), jnp.float32)
    for h in range(heads):
        sl = slice(h * dim_head, (h + 1) * dim_head)
        qh, kh, vh = q[:, sl], k[:, sl], v[:, sl]
        dots = jnp.dot(qh, kh.T, preferred_element_type=jnp.float32) + attn_bias
        dots = dots - jnp.max(dots, axis=-1, keepdims=True)
        e = jnp.exp(dots)
        attn = e * pl.reciprocal(jnp.sum(e, axis=-1, keepdims=True), approx=True)
        out_h = jnp.dot(attn, vh, preferred_element_type=jnp.float32)   # (BN, dh)
        proj = proj + jnp.dot(out_h, wo_ref[sl, :],
                              preferred_element_type=jnp.float32)
    x1 = x + proj + bo_ref[...]                     # residual 1 (+ Wo bias once)

    # ---- PreNorm + FeedForward ----
    xn2 = _layer_norm(x1, ln2_g_ref[...], ln2_b_ref[...])
    h1 = jnp.dot(xn2, w1_ref[...], preferred_element_type=jnp.float32) + b1_ref[...]
    h1 = _gelu_exact(h1)
    ff = jnp.dot(h1, w2_ref[...], preferred_element_type=jnp.float32) + b2_ref[...]
    o_ref[...] = x1 + ff                            # residual 2


def transformer_block(x, params):
    Bb, Nn, Dd = x.shape
    (ln1_g, ln1_b, wqkv, bqkv, wo, bo, ln2_g, ln2_b, w1, b1, w2, b2) = params
    inner = HEADS * DIM_HEAD
    BN = Bb * Nn

    # Split the fused qkv Linear into separate Wq/Wk/Wv (done by XLA, outside
    # the kernel) so the kernel never lane-slices a 3*inner-wide result.
    wq, wk, wv = wqkv[:, :inner], wqkv[:, inner:2 * inner], wqkv[:, 2 * inner:]
    bq, bk, bv = bqkv[:, :inner], bqkv[:, inner:2 * inner], bqkv[:, 2 * inner:]

    # Flatten tokens for all dense projections; attention batch structure is
    # recovered with an additive cross-batch mask (0 same-batch, -1e30 other).
    x2 = x.reshape(BN, Dd)
    bid = jnp.arange(BN, dtype=jnp.int32) // Nn
    attn_bias = jnp.where(bid[:, None] == bid[None, :],
                          jnp.float32(0.0), jnp.float32(-1e30))

    def full(r, c):
        return pl.BlockSpec((r, c), lambda i: (0, 0))

    kernel = functools.partial(transformer_block_kernel,
                               heads=HEADS, dim_head=DIM_HEAD)

    out = pl.pallas_call(
        kernel,
        out_shape=jax.ShapeDtypeStruct((BN, Dd), jnp.float32),
        grid=(1,),                                   # single grid step: whole problem
        in_specs=[
            full(BN, Dd),                            # x  (flattened)
            full(BN, BN),                            # cross-batch additive mask
            full(1, Dd), full(1, Dd),                # ln1 gamma/beta
            full(Dd, inner), full(Dd, inner), full(Dd, inner),   # Wq, Wk, Wv
            full(1, inner), full(1, inner), full(1, inner),      # bq, bk, bv
            full(inner, Dd), full(1, Dd),            # Wo, bo
            full(1, Dd), full(1, Dd),                # ln2 gamma/beta
            full(Dd, HIDDEN), full(1, HIDDEN),       # W1, b1
            full(HIDDEN, Dd), full(1, Dd),           # W2, b2
        ],
        out_specs=full(BN, Dd),
        compiler_params=pltpu.CompilerParams(
            dimension_semantics=("arbitrary",)),
    )(x2, attn_bias, ln1_g, ln1_b, wq, wk, wv, bq, bk, bv,
      wo, bo, ln2_g, ln2_b, w1, b1, w2, b2)

    return out.reshape(Bb, Nn, Dd)


# ---------------- pure-JAX reference for validation -------------------------
def transformer_block_ref(x, params):
    (ln1_g, ln1_b, wqkv, bqkv, wo, bo, ln2_g, ln2_b, w1, b1, w2, b2) = params

    def ln(t, g, b):
        mu = jnp.mean(t, axis=-1, keepdims=True)
        var = jnp.mean((t - mu) ** 2, axis=-1, keepdims=True)
        return (t - mu) * jax.lax.rsqrt(var + LN_EPS) * g[0] + b[0]

    xn = ln(x, ln1_g, ln1_b)
    qkv = xn @ wqkv + bqkv[0]
    q, k, v = jnp.split(qkv, 3, axis=-1)

    def split_heads(t):  # (B,N,H*Dh) -> (B,H,N,Dh)
        return t.reshape(B, N, HEADS, DIM_HEAD).transpose(0, 2, 1, 3)

    qh, kh, vh = map(split_heads, (q, k, v))
    dots = jnp.einsum("bhnd,bhmd->bhnm", qh, kh) * (DIM_HEAD ** -0.5)
    attn = jax.nn.softmax(dots, axis=-1)
    out = jnp.einsum("bhnm,bhmd->bhnd", attn, vh)
    out = out.transpose(0, 2, 1, 3).reshape(B, N, INNER)
    out = out @ wo + bo[0]
    x = x + out

    xn2 = ln(x, ln2_g, ln2_b)
    h1 = xn2 @ w1 + b1[0]
    h1 = 0.5 * h1 * (1.0 + jax.lax.erf(h1 / SQRT2))
    ff = h1 @ w2 + b2[0]
    return x + ff


def make_params(key):
    ks = jax.random.split(key, 8)
    s = 0.05
    ln1_g = jnp.ones((1, D), jnp.float32)
    ln1_b = jnp.zeros((1, D), jnp.float32)
    wqkv = s * jax.random.normal(ks[0], (D, 3 * INNER), jnp.float32)
    bqkv = s * jax.random.normal(ks[1], (1, 3 * INNER), jnp.float32)
    wo = s * jax.random.normal(ks[2], (INNER, D), jnp.float32)
    bo = s * jax.random.normal(ks[3], (1, D), jnp.float32)
    ln2_g = jnp.ones((1, D), jnp.float32)
    ln2_b = jnp.zeros((1, D), jnp.float32)
    w1 = s * jax.random.normal(ks[4], (D, HIDDEN), jnp.float32)
    b1 = s * jax.random.normal(ks[5], (1, HIDDEN), jnp.float32)
    w2 = s * jax.random.normal(ks[6], (HIDDEN, D), jnp.float32)
    b2 = s * jax.random.normal(ks[7], (1, D), jnp.float32)
    return (ln1_g, ln1_b, wqkv, bqkv, wo, bo, ln2_g, ln2_b, w1, b1, w2, b2)


if __name__ == "__main__":
    key = jax.random.PRNGKey(0)
    kx, kp = jax.random.split(key)
    x = jax.random.normal(kx, (B, N, D), jnp.float32)
    params = make_params(kp)

    out = transformer_block(x, params)
    out = jax.block_until_ready(out)

    ref = jax.block_until_ready(transformer_block_ref(x, params))
    assert out.shape == (B, N, D)
    assert jnp.allclose(out, ref, atol=5e-4, rtol=5e-4), "mismatch vs reference"

    print("KERNEL_OK")
</pallas_src>

<mosaic_0001>
module attributes {stable_mosaic.version = 11 : i64} {
  func.func @transformer_block_kernel(%arg0: i32, %arg1: memref<16x32xf32, #tpu.memory_space<vmem>>, %arg2: memref<16x16xf32, #tpu.memory_space<vmem>>, %arg3: memref<1x32xf32, #tpu.memory_space<vmem>>, %arg4: memref<1x32xf32, #tpu.memory_space<vmem>>, %arg5: memref<32x32xf32, #tpu.memory_space<vmem>>, %arg6: memref<32x32xf32, #tpu.memory_space<vmem>>, %arg7: memref<32x32xf32, #tpu.memory_space<vmem>>, %arg8: memref<1x32xf32, #tpu.memory_space<vmem>>, %arg9: memref<1x32xf32, #tpu.memory_space<vmem>>, %arg10: memref<1x32xf32, #tpu.memory_space<vmem>>, %arg11: memref<32x32xf32, #tpu.memory_space<vmem>>, %arg12: memref<1x32xf32, #tpu.memory_space<vmem>>, %arg13: memref<1x32xf32, #tpu.memory_space<vmem>>, %arg14: memref<1x32xf32, #tpu.memory_space<vmem>>, %arg15: memref<32x64xf32, #tpu.memory_space<vmem>>, %arg16: memref<1x64xf32, #tpu.memory_space<vmem>>, %arg17: memref<64x32xf32, #tpu.memory_space<vmem>>, %arg18: memref<1x32xf32, #tpu.memory_space<vmem>>, %arg19: memref<16x32xf32, #tpu.memory_space<vmem>>) attributes {dimension_semantics = [#tpu.dimension_semantics<arbitrary>], iteration_bounds = array<i64: 1>, scalar_prefetch = 0 : i64, scratch_operands = 0 : i64, tpu.core_type = #tpu.core_type<tc>, window_params = [{pipeline_mode = #tpu.pipeline_mode<synchronous>, transform_indices = @transform_0, window_bounds = array<i64: 16, 32>}, {pipeline_mode = #tpu.pipeline_mode<synchronous>, transform_indices = @transform_1, window_bounds = array<i64: 16, 16>}, {pipeline_mode = #tpu.pipeline_mode<synchronous>, transform_indices = @transform_2, window_bounds = array<i64: 1, 32>}, {pipeline_mode = #tpu.pipeline_mode<synchronous>, transform_indices = @transform_3, window_bounds = array<i64: 1, 32>}, {pipeline_mode = #tpu.pipeline_mode<synchronous>, transform_indices = @transform_4, window_bounds = array<i64: 32, 32>}, {pipeline_mode = #tpu.pipeline_mode<synchronous>, transform_indices = @transform_5, window_bounds = array<i64: 32, 32>}, {pipeline_mode = #tpu.pipeline_mode<synchronous>, transform_indices = @transform_6, window_bounds = array<i64: 32, 32>}, {pipeline_mode = #tpu.pipeline_mode<synchronous>, transform_indices = @transform_7, window_bounds = array<i64: 1, 32>}, {pipeline_mode = #tpu.pipeline_mode<synchronous>, transform_indices = @transform_8, window_bounds = array<i64: 1, 32>}, {pipeline_mode = #tpu.pipeline_mode<synchronous>, transform_indices = @transform_9, window_bounds = array<i64: 1, 32>}, {pipeline_mode = #tpu.pipeline_mode<synchronous>, transform_indices = @transform_10, window_bounds = array<i64: 32, 32>}, {pipeline_mode = #tpu.pipeline_mode<synchronous>, transform_indices = @transform_11, window_bounds = array<i64: 1, 32>}, {pipeline_mode = #tpu.pipeline_mode<synchronous>, transform_indices = @transform_12, window_bounds = array<i64: 1, 32>}, {pipeline_mode = #tpu.pipeline_mode<synchronous>, transform_indices = @transform_13, window_bounds = array<i64: 1, 32>}, {pipeline_mode = #tpu.pipeline_mode<synchronous>, transform_indices = @transform_14, window_bounds = array<i64: 32, 64>}, {pipeline_mode = #tpu.pipeline_mode<synchronous>, transform_indices = @transform_15, window_bounds = array<i64: 1, 64>}, {pipeline_mode = #tpu.pipeline_mode<synchronous>, transform_indices = @transform_16, window_bounds = array<i64: 64, 32>}, {pipeline_mode = #tpu.pipeline_mode<synchronous>, transform_indices = @transform_17, window_bounds = array<i64: 1, 32>}, {pipeline_mode = #tpu.pipeline_mode<synchronous>, transform_indices = @transform_18, window_bounds = array<i64: 16, 32>}]} {
    %c0 = arith.constant 0 : index
    %c0_0 = arith.constant 0 : index
    %0 = vector.load %arg1[%c0, %c0_0] : memref<16x32xf32, #tpu.memory_space<vmem>>, vector<16x32xf32>
    %c0_1 = arith.constant 0 : index
    %c0_2 = arith.constant 0 : index
    %1 = vector.load %arg3[%c0_1, %c0_2] : memref<1x32xf32, #tpu.memory_space<vmem>>, vector<1x32xf32>
    %c0_3 = arith.constant 0 : index
    %c0_4 = arith.constant 0 : index
    %2 = vector.load %arg4[%c0_3, %c0_4] : memref<1x32xf32, #tpu.memory_space<vmem>>, vector<1x32xf32>
    %cst = arith.constant dense<0.000000e+00> : vector<16xf32>
    %3 = vector.multi_reduction <add>, %0, %cst [1] : vector<16x32xf32> to vector<16xf32>
    %4 = vector.shape_cast %3 : vector<16xf32> to vector<16x1xf32>
    %cst_5 = arith.constant 3.200000e+01 : f32
    %5 = vector.broadcast %cst_5 : f32 to vector<16x1xf32>
    %6 = arith.divf %4, %5 : vector<16x1xf32>
    %7 = arith.mulf %0, %0 : vector<16x32xf32>
    %cst_6 = arith.constant dense<0.000000e+00> : vector<16xf32>
    %8 = vector.multi_reduction <add>, %7, %cst_6 [1] : vector<16x32xf32> to vector<16xf32>
    %9 = vector.shape_cast %8 : vector<16xf32> to vector<16x1xf32>
    %cst_7 = arith.constant 3.200000e+01 : f32
    %10 = vector.broadcast %cst_7 : f32 to vector<16x1xf32>
    %11 = arith.divf %9, %10 : vector<16x1xf32>
    %12 = arith.mulf %6, %6 : vector<16x1xf32>
    %13 = arith.subf %11, %12 : vector<16x1xf32>
    %14 = vector.broadcast %6 : vector<16x1xf32> to vector<16x32xf32>
    %15 = arith.subf %0, %14 : vector<16x32xf32>
    %cst_8 = arith.constant 9.99999974E-6 : f32
    %16 = vector.broadcast %cst_8 : f32 to vector<16x1xf32>
    %17 = arith.addf %13, %16 : vector<16x1xf32>
    %18 = math.rsqrt %17 : vector<16x1xf32>
    %19 = vector.broadcast %18 : vector<16x1xf32> to vector<16x32xf32>
    %20 = arith.mulf %15, %19 : vector<16x32xf32>
    %21 = vector.broadcast %1 : vector<1x32xf32> to vector<16x32xf32>
    %22 = arith.mulf %20, %21 : vector<16x32xf32>
    %23 = vector.broadcast %2 : vector<1x32xf32> to vector<16x32xf32>
    %24 = arith.addf %22, %23 : vector<16x32xf32>
    %c0_9 = arith.constant 0 : index
    %c0_10 = arith.constant 0 : index
    %25 = vector.load %arg5[%c0_9, %c0_10] : memref<32x32xf32, #tpu.memory_space<vmem>>, vector<32x32xf32>
    %cst_11 = arith.constant dense<0.000000e+00> : vector<16x32xf32>
    %26 = tpu.matmul %24, %25, %cst_11 {dimension_numbers = #tpu.dot_dimension_numbers<[1], [0], [0], [1], [0, 0, 1, 1], [], []>} : vector<16x32xf32>, vector<32x32xf32>, vector<16x32xf32> -> vector<16x32xf32>
    %c0_12 = arith.constant 0 : index
    %c0_13 = arith.constant 0 : index
    %27 = vector.load %arg8[%c0_12, %c0_13] : memref<1x32xf32, #tpu.memory_space<vmem>>, vector<1x32xf32>
    %28 = vector.broadcast %27 : vector<1x32xf32> to vector<16x32xf32>
    %29 = arith.addf %26, %28 : vector<16x32xf32>
    %cst_14 = arith.constant 0.353553385 : f32
    %30 = vector.broadcast %cst_14 : f32 to vector<16x32xf32>
    %31 = arith.mulf %29, %30 : vector<16x32xf32>
    %c0_15 = arith.constant 0 : index
    %c0_16 = arith.constant 0 : index
    %32 = vector.load %arg6[%c0_15, %c0_16] : memref<32x32xf32, #tpu.memory_space<vmem>>, vector<32x32xf32>
    %cst_17 = arith.constant dense<0.000000e+00> : vector<16x32xf32>
    %33 = tpu.matmul %24, %32, %cst_17 {dimension_numbers = #tpu.dot_dimension_numbers<[1], [0], [0], [1], [0, 0, 1, 1], [], []>} : vector<16x32xf32>, vector<32x32xf32>, vector<16x32xf32> -> vector<16x32xf32>
    %c0_18 = arith.constant 0 : index
    %c0_19 = arith.constant 0 : index
    %34 = vector.load %arg9[%c0_18, %c0_19] : memref<1x32xf32, #tpu.memory_space<vmem>>, vector<1x32xf32>
    %35 = vector.broadcast %34 : vector<1x32xf32> to vector<16x32xf32>
    %36 = arith.addf %33, %35 : vector<16x32xf32>
    %c0_20 = arith.constant 0 : index
    %c0_21 = arith.constant 0 : index
    %37 = vector.load %arg7[%c0_20, %c0_21] : memref<32x32xf32, #tpu.memory_space<vmem>>, vector<32x32xf32>
    %cst_22 = arith.constant dense<0.000000e+00> : vector<16x32xf32>
    %38 = tpu.matmul %24, %37, %cst_22 {dimension_numbers = #tpu.dot_dimension_numbers<[1], [0], [0], [1], [0, 0, 1, 1], [], []>} : vector<16x32xf32>, vector<32x32xf32>, vector<16x32xf32> -> vector<16x32xf32>
    %c0_23 = arith.constant 0 : index
    %c0_24 = arith.constant 0 : index
    %39 = vector.load %arg10[%c0_23, %c0_24] : memref<1x32xf32, #tpu.memory_space<vmem>>, vector<1x32xf32>
    %40 = vector.broadcast %39 : vector<1x32xf32> to vector<16x32xf32>
    %41 = arith.addf %38, %40 : vector<16x32xf32>
    %c0_25 = arith.constant 0 : index
    %c0_26 = arith.constant 0 : index
    %42 = vector.load %arg2[%c0_25, %c0_26] : memref<16x16xf32, #tpu.memory_space<vmem>>, vector<16x16xf32>
    %cst_27 = arith.constant 0.000000e+00 : f32
    %43 = vector.broadcast %cst_27 : f32 to vector<16x32xf32>
    %44 = vector.extract_strided_slice %31 {offsets = [0, 0], sizes = [16, 8], strides = [1, 1]} : vector<16x32xf32> to vector<16x8xf32>
    %45 = vector.extract_strided_slice %36 {offsets = [0, 0], sizes = [16, 8], strides = [1, 1]} : vector<16x32xf32> to vector<16x8xf32>
    %46 = vector.extract_strided_slice %41 {offsets = [0, 0], sizes = [16, 8], strides = [1, 1]} : vector<16x32xf32> to vector<16x8xf32>
    %47 = tpu.transpose %45, [1, 0] : vector<16x8xf32> -> vector<8x16xf32>
    %cst_28 = arith.constant dense<0.000000e+00> : vector<16x16xf32>
    %48 = tpu.matmul %44, %47, %cst_28 {dimension_numbers = #tpu.dot_dimension_numbers<[1], [0], [0], [1], [0, 0, 1, 1], [], []>} : vector<16x8xf32>, vector<8x16xf32>, vector<16x16xf32> -> vector<16x16xf32>
    %49 = arith.addf %48, %42 : vector<16x16xf32>
    %cst_29 = arith.constant dense<0xFF800000> : vector<16xf32>
    %50 = vector.multi_reduction <maximumf>, %49, %cst_29 [1] : vector<16x16xf32> to vector<16xf32>
    %51 = vector.shape_cast %50 : vector<16xf32> to vector<16x1xf32>
    %52 = vector.broadcast %51 : vector<16x1xf32> to vector<16x16xf32>
    %53 = arith.subf %49, %52 : vector<16x16xf32>
    %54 = math.exp %53 : vector<16x16xf32>
    %cst_30 = arith.constant dense<0.000000e+00> : vector<16xf32>
    %55 = vector.multi_reduction <add>, %54, %cst_30 [1] : vector<16x16xf32> to vector<16xf32>
    %56 = vector.shape_cast %55 : vector<16xf32> to vector<16x1xf32>
    %57 = tpu.reciprocal %56 {approx = true} : vector<16x1xf32> -> vector<16x1xf32>
    %58 = vector.broadcast %57 : vector<16x1xf32> to vector<16x16xf32>
    %59 = arith.mulf %54, %58 : vector<16x16xf32>
    %cst_31 = arith.constant dense<0.000000e+00> : vector<16x8xf32>
    %60 = tpu.matmul %59, %46, %cst_31 {dimension_numbers = #tpu.dot_dimension_numbers<[1], [0], [0], [1], [0, 0, 1, 1], [], []>} : vector<16x16xf32>, vector<16x8xf32>, vector<16x8xf32> -> vector<16x8xf32>
    %c0_32 = arith.constant 0 : index
    %c0_33 = arith.constant 0 : index
    %61 = vector.load %arg11[%c0_32, %c0_33] : memref<32x32xf32, #tpu.memory_space<vmem>>, vector<8x32xf32>
    %cst_34 = arith.constant dense<0.000000e+00> : vector<16x32xf32>
    %62 = tpu.matmul %60, %61, %cst_34 {dimension_numbers = #tpu.dot_dimension_numbers<[1], [0], [0], [1], [0, 0, 1, 1], [], []>} : vector<16x8xf32>, vector<8x32xf32>, vector<16x32xf32> -> vector<16x32xf32>
    %63 = arith.addf %43, %62 : vector<16x32xf32>
    %64 = vector.extract_strided_slice %31 {offsets = [0, 8], sizes = [16, 8], strides = [1, 1]} : vector<16x32xf32> to vector<16x8xf32>
    %65 = vector.extract_strided_slice %36 {offsets = [0, 8], sizes = [16, 8], strides = [1, 1]} : vector<16x32xf32> to vector<16x8xf32>
    %66 = vector.extract_strided_slice %41 {offsets = [0, 8], sizes = [16, 8], strides = [1, 1]} : vector<16x32xf32> to vector<16x8xf32>
    %67 = tpu.transpose %65, [1, 0] : vector<16x8xf32> -> vector<8x16xf32>
    %cst_35 = arith.constant dense<0.000000e+00> : vector<16x16xf32>
    %68 = tpu.matmul %64, %67, %cst_35 {dimension_numbers = #tpu.dot_dimension_numbers<[1], [0], [0], [1], [0, 0, 1, 1], [], []>} : vector<16x8xf32>, vector<8x16xf32>, vector<16x16xf32> -> vector<16x16xf32>
    %69 = arith.addf %68, %42 : vector<16x16xf32>
    %cst_36 = arith.constant dense<0xFF800000> : vector<16xf32>
    %70 = vector.multi_reduction <maximumf>, %69, %cst_36 [1] : vector<16x16xf32> to vector<16xf32>
    %71 = vector.shape_cast %70 : vector<16xf32> to vector<16x1xf32>
    %72 = vector.broadcast %71 : vector<16x1xf32> to vector<16x16xf32>
    %73 = arith.subf %69, %72 : vector<16x16xf32>
    %74 = math.exp %73 : vector<16x16xf32>
    %cst_37 = arith.constant dense<0.000000e+00> : vector<16xf32>
    %75 = vector.multi_reduction <add>, %74, %cst_37 [1] : vector<16x16xf32> to vector<16xf32>
    %76 = vector.shape_cast %75 : vector<16xf32> to vector<16x1xf32>
    %77 = tpu.reciprocal %76 {approx = true} : vector<16x1xf32> -> vector<16x1xf32>
    %78 = vector.broadcast %77 : vector<16x1xf32> to vector<16x16xf32>
    %79 = arith.mulf %74, %78 : vector<16x16xf32>
    %cst_38 = arith.constant dense<0.000000e+00> : vector<16x8xf32>
    %80 = tpu.matmul %79, %66, %cst_38 {dimension_numbers = #tpu.dot_dimension_numbers<[1], [0], [0], [1], [0, 0, 1, 1], [], []>} : vector<16x16xf32>, vector<16x8xf32>, vector<16x8xf32> -> vector<16x8xf32>
    %c8 = arith.constant 8 : index
    %c0_39 = arith.constant 0 : index
    %81 = vector.load %arg11[%c8, %c0_39] : memref<32x32xf32, #tpu.memory_space<vmem>>, vector<8x32xf32>
    %cst_40 = arith.constant dense<0.000000e+00> : vector<16x32xf32>
    %82 = tpu.matmul %80, %81, %cst_40 {dimension_numbers = #tpu.dot_dimension_numbers<[1], [0], [0], [1], [0, 0, 1, 1], [], []>} : vector<16x8xf32>, vector<8x32xf32>, vector<16x32xf32> -> vector<16x32xf32>
    %83 = arith.addf %63, %82 : vector<16x32xf32>
    %84 = vector.extract_strided_slice %31 {offsets = [0, 16], sizes = [16, 8], strides = [1, 1]} : vector<16x32xf32> to vector<16x8xf32>
    %85 = vector.extract_strided_slice %36 {offsets = [0, 16], sizes = [16, 8], strides = [1, 1]} : vector<16x32xf32> to vector<16x8xf32>
    %86 = vector.extract_strided_slice %41 {offsets = [0, 16], sizes = [16, 8], strides = [1, 1]} : vector<16x32xf32> to vector<16x8xf32>
    %87 = tpu.transpose %85, [1, 0] : vector<16x8xf32> -> vector<8x16xf32>
    %cst_41 = arith.constant dense<0.000000e+00> : vector<16x16xf32>
    %88 = tpu.matmul %84, %87, %cst_41 {dimension_numbers = #tpu.dot_dimension_numbers<[1], [0], [0], [1], [0, 0, 1, 1], [], []>} : vector<16x8xf32>, vector<8x16xf32>, vector<16x16xf32> -> vector<16x16xf32>
    %89 = arith.addf %88, %42 : vector<16x16xf32>
    %cst_42 = arith.constant dense<0xFF800000> : vector<16xf32>
    %90 = vector.multi_reduction <maximumf>, %89, %cst_42 [1] : vector<16x16xf32> to vector<16xf32>
    %91 = vector.shape_cast %90 : vector<16xf32> to vector<16x1xf32>
    %92 = vector.broadcast %91 : vector<16x1xf32> to vector<16x16xf32>
    %93 = arith.subf %89, %92 : vector<16x16xf32>
    %94 = math.exp %93 : vector<16x16xf32>
    %cst_43 = arith.constant dense<0.000000e+00> : vector<16xf32>
    %95 = vector.multi_reduction <add>, %94, %cst_43 [1] : vector<16x16xf32> to vector<16xf32>
    %96 = vector.shape_cast %95 : vector<16xf32> to vector<16x1xf32>
    %97 = tpu.reciprocal %96 {approx = true} : vector<16x1xf32> -> vector<16x1xf32>
    %98 = vector.broadcast %97 : vector<16x1xf32> to vector<16x16xf32>
    %99 = arith.mulf %94, %98 : vector<16x16xf32>
    %cst_44 = arith.constant dense<0.000000e+00> : vector<16x8xf32>
    %100 = tpu.matmul %99, %86, %cst_44 {dimension_numbers = #tpu.dot_dimension_numbers<[1], [0], [0], [1], [0, 0, 1, 1], [], []>} : vector<16x16xf32>, vector<16x8xf32>, vector<16x8xf32> -> vector<16x8xf32>
    %c16 = arith.constant 16 : index
    %c0_45 = arith.constant 0 : index
    %101 = vector.load %arg11[%c16, %c0_45] : memref<32x32xf32, #tpu.memory_space<vmem>>, vector<8x32xf32>
    %cst_46 = arith.constant dense<0.000000e+00> : vector<16x32xf32>
    %102 = tpu.matmul %100, %101, %cst_46 {dimension_numbers = #tpu.dot_dimension_numbers<[1], [0], [0], [1], [0, 0, 1, 1], [], []>} : vector<16x8xf32>, vector<8x32xf32>, vector<16x32xf32> -> vector<16x32xf32>
    %103 = arith.addf %83, %102 : vector<16x32xf32>
    %104 = vector.extract_strided_slice %31 {offsets = [0, 24], sizes = [16, 8], strides = [1, 1]} : vector<16x32xf32> to vector<16x8xf32>
    %105 = vector.extract_strided_slice %36 {offsets = [0, 24], sizes = [16, 8], strides = [1, 1]} : vector<16x32xf32> to vector<16x8xf32>
    %106 = vector.extract_strided_slice %41 {offsets = [0, 24], sizes = [16, 8], strides = [1, 1]} : vector<16x32xf32> to vector<16x8xf32>
    %107 = tpu.transpose %105, [1, 0] : vector<16x8xf32> -> vector<8x16xf32>
    %cst_47 = arith.constant dense<0.000000e+00> : vector<16x16xf32>
    %108 = tpu.matmul %104, %107, %cst_47 {dimension_numbers = #tpu.dot_dimension_numbers<[1], [0], [0], [1], [0, 0, 1, 1], [], []>} : vector<16x8xf32>, vector<8x16xf32>, vector<16x16xf32> -> vector<16x16xf32>
    %109 = arith.addf %108, %42 : vector<16x16xf32>
    %cst_48 = arith.constant dense<0xFF800000> : vector<16xf32>
    %110 = vector.multi_reduction <maximumf>, %109, %cst_48 [1] : vector<16x16xf32> to vector<16xf32>
    %111 = vector.shape_cast %110 : vector<16xf32> to vector<16x1xf32>
    %112 = vector.broadcast %111 : vector<16x1xf32> to vector<16x16xf32>
    %113 = arith.subf %109, %112 : vector<16x16xf32>
    %114 = math.exp %113 : vector<16x16xf32>
    %cst_49 = arith.constant dense<0.000000e+00> : vector<16xf32>
    %115 = vector.multi_reduction <add>, %114, %cst_49 [1] : vector<16x16xf32> to vector<16xf32>
    %116 = vector.shape_cast %115 : vector<16xf32> to vector<16x1xf32>
    %117 = tpu.reciprocal %116 {approx = true} : vector<16x1xf32> -> vector<16x1xf32>
    %118 = vector.broadcast %117 : vector<16x1xf32> to vector<16x16xf32>
    %119 = arith.mulf %114, %118 : vector<16x16xf32>
    %cst_50 = arith.constant dense<0.000000e+00> : vector<16x8xf32>
    %120 = tpu.matmul %119, %106, %cst_50 {dimension_numbers = #tpu.dot_dimension_numbers<[1], [0], [0], [1], [0, 0, 1, 1], [], []>} : vector<16x16xf32>, vector<16x8xf32>, vector<16x8xf32> -> vector<16x8xf32>
    %c24 = arith.constant 24 : index
    %c0_51 = arith.constant 0 : index
    %121 = vector.load %arg11[%c24, %c0_51] : memref<32x32xf32, #tpu.memory_space<vmem>>, vector<8x32xf32>
    %cst_52 = arith.constant dense<0.000000e+00> : vector<16x32xf32>
    %122 = tpu.matmul %120, %121, %cst_52 {dimension_numbers = #tpu.dot_dimension_numbers<[1], [0], [0], [1], [0, 0, 1, 1], [], []>} : vector<16x8xf32>, vector<8x32xf32>, vector<16x32xf32> -> vector<16x32xf32>
    %123 = arith.addf %103, %122 : vector<16x32xf32>
    %124 = arith.addf %0, %123 : vector<16x32xf32>
    %c0_53 = arith.constant 0 : index
    %c0_54 = arith.constant 0 : index
    %125 = vector.load %arg12[%c0_53, %c0_54] : memref<1x32xf32, #tpu.memory_space<vmem>>, vector<1x32xf32>
    %126 = vector.broadcast %125 : vector<1x32xf32> to vector<16x32xf32>
    %127 = arith.addf %124, %126 : vector<16x32xf32>
    %c0_55 = arith.constant 0 : index
    %c0_56 = arith.constant 0 : index
    %128 = vector.load %arg13[%c0_55, %c0_56] : memref<1x32xf32, #tpu.memory_space<vmem>>, vector<1x32xf32>
    %c0_57 = arith.constant 0 : index
    %c0_58 = arith.constant 0 : index
    %129 = vector.load %arg14[%c0_57, %c0_58] : memref<1x32xf32, #tpu.memory_space<vmem>>, vector<1x32xf32>
    %cst_59 = arith.constant dense<0.000000e+00> : vector<16xf32>
    %130 = vector.multi_reduction <add>, %127, %cst_59 [1] : vector<16x32xf32> to vector<16xf32>
    %131 = vector.shape_cast %130 : vector<16xf32> to vector<16x1xf32>
    %cst_60 = arith.constant 3.200000e+01 : f32
    %132 = vector.broadcast %cst_60 : f32 to vector<16x1xf32>
    %133 = arith.divf %131, %132 : vector<16x1xf32>
    %134 = arith.mulf %127, %127 : vector<16x32xf32>
    %cst_61 = arith.constant dense<0.000000e+00> : vector<16xf32>
    %135 = vector.multi_reduction <add>, %134, %cst_61 [1] : vector<16x32xf32> to vector<16xf32>
    %136 = vector.shape_cast %135 : vector<16xf32> to vector<16x1xf32>
    %cst_62 = arith.constant 3.200000e+01 : f32
    %137 = vector.broadcast %cst_62 : f32 to vector<16x1xf32>
    %138 = arith.divf %136, %137 : vector<16x1xf32>
    %139 = arith.mulf %133, %133 : vector<16x1xf32>
    %140 = arith.subf %138, %139 : vector<16x1xf32>
    %141 = vector.broadcast %133 : vector<16x1xf32> to vector<16x32xf32>
    %142 = arith.subf %127, %141 : vector<16x32xf32>
    %cst_63 = arith.constant 9.99999974E-6 : f32
    %143 = vector.broadcast %cst_63 : f32 to vector<16x1xf32>
    %144 = arith.addf %140, %143 : vector<16x1xf32>
    %145 = math.rsqrt %144 : vector<16x1xf32>
    %146 = vector.broadcast %145 : vector<16x1xf32> to vector<16x32xf32>
    %147 = arith.mulf %142, %146 : vector<16x32xf32>
    %148 = vector.broadcast %128 : vector<1x32xf32> to vector<16x32xf32>
    %149 = arith.mulf %147, %148 : vector<16x32xf32>
    %150 = vector.broadcast %129 : vector<1x32xf32> to vector<16x32xf32>
    %151 = arith.addf %149, %150 : vector<16x32xf32>
    %c0_64 = arith.constant 0 : index
    %c0_65 = arith.constant 0 : index
    %152 = vector.load %arg15[%c0_64, %c0_65] : memref<32x64xf32, #tpu.memory_space<vmem>>, vector<32x64xf32>
    %cst_66 = arith.constant dense<0.000000e+00> : vector<16x64xf32>
    %153 = tpu.matmul %151, %152, %cst_66 {dimension_numbers = #tpu.dot_dimension_numbers<[1], [0], [0], [1], [0, 0, 1, 1], [], []>} : vector<16x32xf32>, vector<32x64xf32>, vector<16x64xf32> -> vector<16x64xf32>
    %c0_67 = arith.constant 0 : index
    %c0_68 = arith.constant 0 : index
    %154 = vector.load %arg16[%c0_67, %c0_68] : memref<1x64xf32, #tpu.memory_space<vmem>>, vector<1x64xf32>
    %155 = vector.broadcast %154 : vector<1x64xf32> to vector<16x64xf32>
    %156 = arith.addf %153, %155 : vector<16x64xf32>
    %cst_69 = arith.constant 5.000000e-01 : f32
    %157 = vector.broadcast %cst_69 : f32 to vector<16x64xf32>
    %158 = arith.mulf %157, %156 : vector<16x64xf32>
    %cst_70 = arith.constant 1.41421354 : f32
    %159 = vector.broadcast %cst_70 : f32 to vector<16x64xf32>
    %160 = arith.divf %156, %159 : vector<16x64xf32>
    %161 = math.erf %160 : vector<16x64xf32>
    %cst_71 = arith.constant 1.000000e+00 : f32
    %162 = vector.broadcast %cst_71 : f32 to vector<16x64xf32>
    %163 = arith.addf %162, %161 : vector<16x64xf32>
    %164 = arith.mulf %158, %163 : vector<16x64xf32>
    %c0_72 = arith.constant 0 : index
    %c0_73 = arith.constant 0 : index
    %165 = vector.load %arg17[%c0_72, %c0_73] : memref<64x32xf32, #tpu.memory_space<vmem>>, vector<64x32xf32>
    %cst_74 = arith.constant dense<0.000000e+00> : vector<16x32xf32>
    %166 = tpu.matmul %164, %165, %cst_74 {dimension_numbers = #tpu.dot_dimension_numbers<[1], [0], [0], [1], [0, 0, 1, 1], [], []>} : vector<16x64xf32>, vector<64x32xf32>, vector<16x32xf32> -> vector<16x32xf32>
    %c0_75 = arith.constant 0 : index
    %c0_76 = arith.constant 0 : index
    %167 = vector.load %arg18[%c0_75, %c0_76] : memref<1x32xf32, #tpu.memory_space<vmem>>, vector<1x32xf32>
    %168 = vector.broadcast %167 : vector<1x32xf32> to vector<16x32xf32>
    %169 = arith.addf %166, %168 : vector<16x32xf32>
    %170 = arith.addf %127, %169 : vector<16x32xf32>
    %c0_77 = arith.constant 0 : index
    %c0_78 = arith.constant 0 : index
    %171 = vector.load %arg19[%c0_77, %c0_78] : memref<16x32xf32, #tpu.memory_space<vmem>>, vector<16x32xf32>
    tpu.vector_store %arg19[%c0_77, %c0_78], %170 {strides = array<i32>} : memref<16x32xf32, #tpu.memory_space<vmem>>, vector<16x32xf32>,
    return
  }
  func.func @transform_0(%arg0: i32) -> (i32, i32) {
    %c0_i32 = arith.constant 0 : i32
    %c0_i32_0 = arith.constant 0 : i32
    %c0_i32_1 = arith.constant 0 : i32
    return %c0_i32, %c0_i32_0 : i32, i32
  }
  func.func @transform_1(%arg0: i32) -> (i32, i32) {
    %c0_i32 = arith.constant 0 : i32
    %c0_i32_0 = arith.constant 0 : i32
    %c0_i32_1 = arith.constant 0 : i32
    return %c0_i32, %c0_i32_0 : i32, i32
  }
  func.func @transform_2(%arg0: i32) -> (i32, i32) {
    %c0_i32 = arith.constant 0 : i32
    %c0_i32_0 = arith.constant 0 : i32
    %c0_i32_1 = arith.constant 0 : i32
    return %c0_i32, %c0_i32_0 : i32, i32
  }
  func.func @transform_3(%arg0: i32) -> (i32, i32) {
    %c0_i32 = arith.constant 0 : i32
    %c0_i32_0 = arith.constant 0 : i32
    %c0_i32_1 = arith.constant 0 : i32
    return %c0_i32, %c0_i32_0 : i32, i32
  }
  func.func @transform_4(%arg0: i32) -> (i32, i32) {
    %c0_i32 = arith.constant 0 : i32
    %c0_i32_0 = arith.constant 0 : i32
    %c0_i32_1 = arith.constant 0 : i32
    return %c0_i32, %c0_i32_0 : i32, i32
  }
  func.func @transform_5(%arg0: i32) -> (i32, i32) {
    %c0_i32 = arith.constant 0 : i32
    %c0_i32_0 = arith.constant 0 : i32
    %c0_i32_1 = arith.constant 0 : i32
    return %c0_i32, %c0_i32_0 : i32, i32
  }
  func.func @transform_6(%arg0: i32) -> (i32, i32) {
    %c0_i32 = arith.constant 0 : i32
    %c0_i32_0 = arith.constant 0 : i32
    %c0_i32_1 = arith.constant 0 : i32
    return %c0_i32, %c0_i32_0 : i32, i32
  }
  func.func @transform_7(%arg0: i32) -> (i32, i32) {
    %c0_i32 = arith.constant 0 : i32
    %c0_i32_0 = arith.constant 0 : i32
    %c0_i32_1 = arith.constant 0 : i32
    return %c0_i32, %c0_i32_0 : i32, i32
  }
  func.func @transform_8(%arg0: i32) -> (i32, i32) {
    %c0_i32 = arith.constant 0 : i32
    %c0_i32_0 = arith.constant 0 : i32
    %c0_i32_1 = arith.constant 0 : i32
    return %c0_i32, %c0_i32_0 : i32, i32
  }
  func.func @transform_9(%arg0: i32) -> (i32, i32) {
    %c0_i32 = arith.constant 0 : i32
    %c0_i32_0 = arith.constant 0 : i32
    %c0_i32_1 = arith.constant 0 : i32
    return %c0_i32, %c0_i32_0 : i32, i32
  }
  func.func @transform_10(%arg0: i32) -> (i32, i32) {
    %c0_i32 = arith.constant 0 : i32
    %c0_i32_0 = arith.constant 0 : i32
    %c0_i32_1 = arith.constant 0 : i32
    return %c0_i32, %c0_i32_0 : i32, i32
  }
  func.func @transform_11(%arg0: i32) -> (i32, i32) {
    %c0_i32 = arith.constant 0 : i32
    %c0_i32_0 = arith.constant 0 : i32
    %c0_i32_1 = arith.constant 0 : i32
    return %c0_i32, %c0_i32_0 : i32, i32
  }
  func.func @transform_12(%arg0: i32) -> (i32, i32) {
    %c0_i32 = arith.constant 0 : i32
    %c0_i32_0 = arith.constant 0 : i32
    %c0_i32_1 = arith.constant 0 : i32
    return %c0_i32, %c0_i32_0 : i32, i32
  }
  func.func @transform_13(%arg0: i32) -> (i32, i32) {
    %c0_i32 = arith.constant 0 : i32
    %c0_i32_0 = arith.constant 0 : i32
    %c0_i32_1 = arith.constant 0 : i32
    return %c0_i32, %c0_i32_0 : i32, i32
  }
  func.func @transform_14(%arg0: i32) -> (i32, i32) {
    %c0_i32 = arith.constant 0 : i32
    %c0_i32_0 = arith.constant 0 : i32
    %c0_i32_1 = arith.constant 0 : i32
    return %c0_i32, %c0_i32_0 : i32, i32
  }
  func.func @transform_15(%arg0: i32) -> (i32, i32) {
    %c0_i32 = arith.constant 0 : i32
    %c0_i32_0 = arith.constant 0 : i32
    %c0_i32_1 = arith.constant 0 : i32
    return %c0_i32, %c0_i32_0 : i32, i32
  }
  func.func @transform_16(%arg0: i32) -> (i32, i32) {
    %c0_i32 = arith.constant 0 : i32
    %c0_i32_0 = arith.constant 0 : i32
    %c0_i32_1 = arith.constant 0 : i32
    return %c0_i32, %c0_i32_0 : i32, i32
  }
  func.func @transform_17(%arg0: i32) -> (i32, i32) {
    %c0_i32 = arith.constant 0 : i32
    %c0_i32_0 = arith.constant 0 : i32
    %c0_i32_1 = arith.constant 0 : i32
    return %c0_i32, %c0_i32_0 : i32, i32
  }
  func.func @transform_18(%arg0: i32) -> (i32, i32) {
    %c0_i32 = arith.constant 0 : i32
    %c0_i32_0 = arith.constant 0 : i32
    %c0_i32_1 = arith.constant 0 : i32
    return %c0_i32, %c0_i32_0 : i32, i32
  }
}

</mosaic_0001>

<bundles_post_ra>
// kernel: tpu_custom_call.1
= control target key start
LH: loop header
LB: loop body
LE: loop exit
PB: predicated region body
PF: predicated region fallthrough
CT: control target
= control target key end

     0   :  { %s1749_s0 = inlined_call_operand.hbm [shape: f32[16,32], index: 0, kind: input, shape index: {}]   ;;  %s1750_s1 = inlined_call_operand.hbm [shape: f32[16,16], index: 1, kind: input, shape index: {}]   ;;  %s1751_s2 = inlined_call_operand.vmem [shape: f32[1,32], index: 2, kind: input, shape index: {}]   ;;  %s1752_s3 = inlined_call_operand.hbm [shape: f32[1,32], index: 3, kind: input, shape index: {}]   ;;  %s1753_s4 = inlined_call_operand.vmem [shape: f32[32,32], index: 4, kind: input, shape index: {}]   ;;  %s1754_s5 = inlined_call_operand.vmem [shape: f32[32,32], index: 5, kind: input, shape index: {}]   ;;  %s1755_s6 = inlined_call_operand.vmem [shape: f32[32,32], index: 6, kind: input, shape index: {}]   ;;  %s1756_s7 = inlined_call_operand.vmem [shape: f32[1,32], index: 7, kind: input, shape index: {}]   ;;  %s1757_s8 = inlined_call_operand.vmem [shape: f32[1,32], index: 8, kind: input, shape index: {}]   ;;  %s1758_s9 = inlined_call_operand.vmem [shape: f32[1,32], index: 9, kind: input, shape index: {}]   ;;  %s1759_s10 = inlined_call_operand.hbm [shape: f32[32,32], index: 10, kind: input, shape index: {}]   ;;  %s1760_s11 = inlined_call_operand.vmem [shape: f32[1,32], index: 11, kind: input, shape index: {}]   ;;  %s1761_s12 = inlined_call_operand.vmem [shape: f32[1,32], index: 12, kind: input, shape index: {}]   ;;  %s1762_s13 = inlined_call_operand.vmem [shape: f32[1,32], index: 13, kind: input, shape index: {}]   ;;  %s1763_s14 = inlined_call_operand.hbm [shape: f32[32,64], index: 14, kind: input, shape index: {}]   ;;  %s1764_s15 = inlined_call_operand.vmem [shape: f32[1,64], index: 15, kind: input, shape index: {}]   ;;  %s1765_s16 = inlined_call_operand.vmem [shape: f32[64,32], index: 16, kind: input, shape index: {}]   ;;  %s1766_s17 = inlined_call_operand.vmem [shape: f32[1,32], index: 17, kind: input, shape index: {}]   ;;  %s1767_s18 = inlined_call_operand.hbm [shape: f32[16,32], index: 18, kind: output, shape index: {}]  }
   0x1   :  { %1768 = sst [smem:[#allocation16_spill]] %s1749_s0 }
   0x2   :  { %1769 = sst [smem:[#allocation17_spill]] %s1750_s1 }
   0x3   :  { %1770 = sst [smem:[#allocation18_spill]] %s1751_s2 }
   0x4   :  { %23 = vsyncpa [#allocation3], 0 }
   0x5   :  { %24 = vsyncpa [#allocation6], 0 }
   0x6   :  { %25 = vsyncpa [#allocation9], 0 }
   0x7   :  { %26 = vsyncpa [#allocation4], 0  ;;  %s1771_s29 = sld [smem:[#allocation17_spill]]  ;;  %s1364_s0 = smov [#allocation5]  }
   0x8   :  { %s46_s19 = sshll.u32 %s1364_s0, 4  ;;  %s82_s21 = sshll.u32 %s1759_s10, 4  ;;  %s47_s19 = int_to_ptr.vmem [resolvable:$true] %s46_s19  ;;  %s83_s21 = int_to_ptr.hbm [resolvable:$true] %s82_s21 }
   0x9   :  { %s1365_s22 = smov 128   ;;  %s1366_s2 = smov 8  }
   0xa   :  { %s1367_s23 = smov [#allocation8]   ;;  %s1772_s27 = sld [smem:[#allocation16_spill]] }
   0xb   :  { %s84_s24 = sshll.u32 %s1367_s23, 4  ;;  %s60_s0 = sshll.u32 %s1752_s3, 4  ;;  %s85_s24 = int_to_ptr.vmem [resolvable:$true] %s84_s24  ;;  %s61_s0 = int_to_ptr.hbm [resolvable:$true] %s60_s0 }
   0xc   :  { %90 = dma.hbm_to_vmem [thread:$0]  %s83_s21, 512, %s85_s24, [#allocation9], %s1365_s22, %s1365_s22, %s1366_s2  }
   0xd   :  { %s44_s30 = sshll.u32 %s1771_s29, 4  ;;  %s1368_s1 = smov [#allocation2]   ;;  %s45_s30 = int_to_ptr.hbm [resolvable:$true] %s44_s30 }
   0xe   :  { %52 = dma.hbm_to_vmem [thread:$0]  %s45_s30, 256, %s47_s19, [#allocation6], %s1365_s22, %s1365_s22, %s1366_s2  }
   0xf   :  { %s33_s20 = sshll.u32 %s1368_s1, 4  ;;  %s1369_s30 = smov [#allocation7]   ;;  %s34_s20 = int_to_ptr.vmem [resolvable:$true] %s33_s20 }
  0x10   :  { %s31_s28 = sshll.u32 %s1772_s27, 4  ;;  %s62_s19 = sshll.u32 %s1369_s30, 4  ;;  %s32_s28 = int_to_ptr.hbm [resolvable:$true] %s31_s28  ;;  %s63_s19 = int_to_ptr.vmem [resolvable:$true] %s62_s19 }
  0x11   :  { %39 = dma.hbm_to_vmem [thread:$0]  %s32_s28, 256, %s34_s20, [#allocation3], %s1365_s22, %s1365_s22, %s1366_s2  }
  0x12   :  { %s101_s26 = sshll.u32 %s1763_s14, 4  ;;  %s1370_s21 = smov [#allocation10]   ;;  %s102_s26 = int_to_ptr.hbm [resolvable:$true] %s101_s26 }
  0x13   :  { %65 = dma.hbm_to_vmem [thread:$0]  %s61_s0, 16, %s63_s19, [#allocation6]  }
  0x14   :  { %s103_s24 = sshll.u32 %s1370_s21, 4  ;;  %s104_s24 = int_to_ptr.vmem [resolvable:$true] %s103_s24 }
  0x15   :  { %109 = dma.hbm_to_vmem [thread:$0]  %s102_s26, 512, %s104_s24, [#allocation9], %s1365_s22, %s1365_s22, %s1366_s2  }
  0x16   :  { %1356 = dma.done.wait [#allocation3], 256  }
  0x17   :  { %1357 = vsyncadd [#allocation3], 4294967040 }
  0x18   :  { %1358 = dma.done.wait [#allocation6], 272  }
  0x19   :  { %1359 = vsyncadd [#allocation6], 4294967024 }
  0x1a   :  { %1360 = dma.done.wait [#allocation9], 1024  }
  0x1b   :  { %1361 = vsyncadd [#allocation9], 4294966272  ;;  %vm140_vm0 = vcmask 261120   ;;  %v1499_v0 = vld [vmem:[#allocation2 + $0x8] sm:$0xff]  ;;  %v1501_v1 = vld [vmem:[#allocation2] sm:$0xff]  ;;  %v1371_v8 = vmov 32.0  }
  0x1c   :  { %v144_v2 = vsel %vm140_vm0, %v1499_v0, 0.0  ;;  %v141_v3 = vsel %vm140_vm0, %v1501_v1, 0.0  ;;  %v157_v4 = vmul.f32 %v1499_v0, %v1499_v0  ;;  %v156_v5 = vmul.f32 %v1501_v1, %v1501_v1  ;;  %v209_v14 = vld [vmem:[%s1753_s4 + $0x18] sm:$0xff]  ;;  %v208_v16 = vld [vmem:[%s1753_s4 + $0x10] sm:$0xff]  ;;  %v207_v20 = vld [vmem:[%s1753_s4 + $0x8] sm:$0xff]  ;;  %s1773_s1 = sld [smem:[#allocation18_spill]] }
  0x1d   :  { %145 = vadd.xlane.f32.xlu0 %v144_v2  ;;  %142 = vadd.xlane.f32.xlu1 %v141_v3  ;;  %1164 = vrcp.f32 %v1371_v8  ;;  %v279_v15 = vld [vmem:[%s1755_s6 + $0x18] sm:$0xff]  ;;  %v278_v19 = vld [vmem:[%s1755_s6 + $0x10] sm:$0xff]  ;;  %v277_v22 = vld [vmem:[%s1755_s6 + $0x8] sm:$0xff]  ;;  %vm309_vm8 = vcmask 64512   ;;  %vm345_vm9 = vcmask 130048   ;;  %s1063_s3 = sshll.u32 %s1767_s18, 4  ;;  %s1064_s3 = int_to_ptr.hbm [resolvable:$true] %s1063_s3 }
  0x1e   :  { %v161_v6 = vsel %vm140_vm0, %v157_v4, 0.0  ;;  %v158_v7 = vsel %vm140_vm0, %v156_v5, 0.0  ;;  %232 = vmatpush.msra.mxu0 %v209_v14  ;;  %1122 = vmatpush.msra.mxu1 %v209_v14  ;;  %v206_v24 = vld [vmem:[%s1753_s4] sm:$0xff]  ;;  %v248_v30 = vld [vmem:[%s1754_s5 + $0x18] sm:$0xff]  ;;  %v247_v31 = vld [vmem:[%s1754_s5 + $0x10] sm:$0xff] }
  0x1f   :  { %296 = vmatpush.msra.mxu2 %v279_v15  ;;  %v276_v25 = vld [vmem:[%s1755_s6] sm:$0xff]  ;;  %v246_v35 = vld [vmem:[%s1754_s5 + $0x8] sm:$0xff] }
  0x20   :  { %233 = vmatpush.msra.mxu0 %v208_v16  ;;  %1123 = vmatpush.msra.mxu1 %v208_v16  ;;  %v245_v38 = vld [vmem:[%s1754_s5] sm:$0xff] }
  0x21   :  { %297 = vmatpush.msra.mxu2 %v278_v19  ;;  %v1155_v58 = vld [vmem:[#allocation7] ss:$0 sm:$0xff] }
  0x22   :  { %234 = vmatpush.msra.mxu0 %v207_v20  ;;  %1124 = vmatpush.msra.mxu1 %v207_v20  ;;  %v1154_v54 = vld [vmem:[%s1773_s1] ss:$0 sm:$0xff] }
  0x23   :  { %v1165_v9 = vpop.eup %1164  ;;  %298 = vmatpush.msra.mxu2 %v277_v22  ;;  %v1581_v22 = vld [vmem:[#allocation5] sm:$0xff] }
  0x24   :  { %v148_v10 = vmul.f32 32.0, %v1165_v9  ;;  %vm152_vm1 = vweird.f32 %v1165_v9  ;;  %235 = vmatpush.msra.mxu0 %v206_v24  ;;  %1125 = vmatpush.msra.mxu1 %v206_v24 }
  0x25   :  { %162 = vadd.xlane.f32.xlu0 %v161_v6  ;;  %159 = vadd.xlane.f32.xlu1 %v158_v7  ;;  %v1157_v6 = vld [vmem:[%s1758_s9] ss:$0 sm:$0xff]  ;;  %s1374_s9 = smov 104  }
  0x26   :  { %v149_v11 = vsub.f32 1.0, %v148_v10  ;;  %299 = vmatpush.msra.mxu2 %v276_v25  ;;  %265 = vmatpush.msrb.mxu1 %v248_v30  ;;  %v1158_v7 = vld [vmem:[%s1757_s8] ss:$0 sm:$0xff]  ;;  %s1373_s8 = smov 112  }
  0x28   :  { %v150_v12 = vmul.f32 %v1165_v9, %v149_v11  ;;  %266 = vmatpush.msrb.mxu1 %v247_v31 }
  0x2a   :  { %v151_v13 = vadd.f32 %v1165_v9, %v150_v12  ;;  %267 = vmatpush.msrb.mxu1 %v246_v35 }
  0x2c   :  { %v1528_v21 = vsel %vm152_vm1, %v1165_v9, %v151_v13  ;;  %268 = vmatpush.msrb.mxu1 %v245_v38  ;;  %v1156_v9 = vld [vmem:[%s1756_s7] ss:$0 sm:$0xff]  ;;  %s1372_s7 = smov 120  }
  0x90   :  { %v146_v17 = vpop.xlane.xlu0 %145  ;;  %v143_v18 = vpop.xlane.xlu1 %142 }
  0x91   :  { %v154_v23 = vmul.f32 %v1528_v21, %v143_v18  ;;  %v155_v26 = vmul.f32 %v1528_v21, %v146_v17 }
  0x93   :  { %v166_v27 = vmul.f32 %v154_v23, %v154_v23  ;;  %v167_v32 = vmul.f32 %v155_v26, %v155_v26  ;;  %v171_v52 = vsub.f32 %v1499_v0, %v155_v26  ;;  %v170_v55 = vsub.f32 %v1501_v1, %v154_v23  ;;  %v1585_v26 = vld [vmem:[#allocation5 + $0x8] sm:$0xff] }
  0x98   :  { %v163_v28 = vpop.xlane.xlu0 %162  ;;  %v160_v29 = vpop.xlane.xlu1 %159 }
  0x99   :  { %v165_v33 = vmul.f32 %v163_v28, %v1528_v21  ;;  %v164_v34 = vmul.f32 %v160_v29, %v1528_v21 }
  0x9b   :  { %v169_v36 = vsub.f32 %v165_v33, %v167_v32  ;;  %v168_v37 = vsub.f32 %v164_v34, %v166_v27 }
  0x9d   :  { %v173_v39 = vadd.f32 1e-05, %v169_v36  ;;  %v172_v40 = vadd.f32 1e-05, %v168_v37 }
  0x9f   :  { %1166 = vrsqrt.f32 %v173_v39  ;;  %vm190_vm4 = vweird.f32 %v173_v39  ;;  %vm180_vm6 = vweird.f32 %v172_v40 }
  0xa0   :  { %1168 = vrsqrt.f32 %v172_v40 }
  0xa5   :  { %v1167_v41 = vpop.eup %1166 }
  0xa6   :  { %v1169_v42 = vpop.eup %1168  ;;  %v185_v43 = vmul.f32 %v1167_v41, %v173_v39  ;;  %vm191_vm2 = vweird.f32 %v1167_v41 }
  0xa7   :  { %v175_v44 = vmul.f32 %v1169_v42, %v172_v40  ;;  %vm181_vm3 = vweird.f32 %v1169_v42  ;;  %vm192_vm5 = vmor %vm190_vm4, %vm191_vm2 }
  0xa8   :  { %v186_v45 = vmul.f32 %v1167_v41, %v185_v43  ;;  %vm182_vm7 = vmor %vm180_vm6, %vm181_vm3  ;;  %vm1023_vm6 = vcmask 523264  }
  0xa9   :  { %v176_v46 = vmul.f32 %v1169_v42, %v175_v44 }
  0xaa   :  { %v187_v47 = vmul.f32 0.5, %v186_v45 }
  0xab   :  { %v177_v48 = vmul.f32 0.5, %v176_v46 }
  0xac   :  { %v188_v49 = vsub.f32 1.5, %v187_v47 }
  0xad   :  { %v178_v50 = vsub.f32 1.5, %v177_v48 }
  0xae   :  { %v189_v51 = vmul.f32 %v1167_v41, %v188_v49 }
  0xaf   :  { %v179_v53 = vmul.f32 %v1169_v42, %v178_v50 }
  0xb0   :  { %v193_v56 = vsel %vm192_vm5, %v1167_v41, %v189_v51 }
  0xb1   :  { %v183_v57 = vsel %vm182_vm7, %v1169_v42, %v179_v53  ;;  %v195_v59 = vmul.f32 %v193_v56, %v171_v52  ;;  %v397_v42 = vld [vmem:[#allocation8] sm:$0xff] }
  0xb2   :  { %v194_v60 = vmul.f32 %v183_v57, %v170_v55 }
  0xb3   :  { %v200_v61 = vmul.f32 %v1154_v54, %v195_v59 }
  0xb4   :  { %v199_v62 = vmul.f32 %v1154_v54, %v194_v60 }
  0xb5   :  { %v205_v63 = vadd.f32 %v1155_v58, %v200_v61 }
  0xb6   :  { %v204_v2 = vadd.f32 %v1155_v58, %v199_v62 }
  0xb7   :  { %1079 = vmatmul.msk.f32.vlgmr.msra.gmra.mxu1 %vm140_vm0, %v205_v63 }
  0xb8   :  { %1078 = vmatmul.msk.f32.vlgmr.msra.gmra.mxu0 %vm140_vm0, %v204_v2  ;;  %1082 = vmatmul.msk.f32.vlgmr.msra.gmra.mxu2 %vm140_vm0, %v204_v2 }
  0xbf   :  { %1080 = vmatmul.msk.f32.vlgmr.msrb.gmra.mxu1 %vm140_vm0, %v204_v2 }
  0xc0   :  { %1083 = vmatmul.msk.f32.gmra.mxu2 %vm140_vm0, %v205_v63 }
  0xc7   :  { %1081 = vmatmul.msk.f32.gmra.mxu1 %vm140_vm0, %v205_v63 }
 0x134   :  { %v240_v3 = vpop.f32.mrf.mxu1 }
 0x135   :  { %v237_v13 = vpop.f32.mrf.mxu0  ;;  %v241_v19 = vadd.f32 %v1156_v9, %v240_v3 }
 0x136   :  { %v238_v16 = vadd.f32 %v1156_v9, %v237_v13 }
 0x137   :  { %v244_v20 = vmul.f32 0.35355338, %v241_v19 }
 0x138   :  { %v243_v18 = vmul.f32 0.35355338, %v238_v16 }
 0x13b   :  { %v301_v4 = vpop.f32.mrf.mxu2 }
 0x13c   :  { %v270_v5 = vpop.f32.mrf.mxu1  ;;  %v302_v10 = vadd.f32 %v1157_v6, %v301_v4 }
 0x13d   :  { %v271_v17 = vadd.f32 %v1158_v7, %v270_v5 }
 0x143   :  { %v304_v8 = vpop.f32.mrf.mxu2 }
 0x144   :  { %v305_v11 = vadd.f32 %v1157_v6, %v304_v8  ;;  %v273_v12 = vpop.f32.mrf.mxu1 }
 0x145   :  { %v274_v14 = vadd.f32 %v1158_v7, %v273_v12 }
 0x146   :  { %388 = vmatpush.msrb.mxu0 %v305_v11  ;;  %v1575_v15 = vpack.i.bf16 %v302_v10, %v305_v11 }
 0x147   :  { %1084 = vmatpush.xpose.msk.msra.mxu3 %vm309_vm8, %v274_v14 }
 0x148   :  { %389 = vmatpush.msrb.mxu0 %v302_v10 }
 0x14a   :  { %547 = vmatpush.msra.mxu0 %v397_v42 }
 0x14b   :  { %1085 = vmatpush.xpose.msk.msra.mxu3 %vm309_vm8, %v271_v17 }
 0x14e   :  { %1086 = vmatmul.msk.f32.vlgmr.msra.gmra.mxu3 %vm309_vm8, %v243_v18 }
 0x156   :  { %1087 = vmatmul.msk.f32.gmra.mxu3 %vm309_vm8, %v244_v20 }
 0x1d1   :  { %v339_v23 = vpop.f32.mrf.mxu3 }
 0x1d2   :  { %v340_v24 = vadd.f32 %v339_v23, %v1581_v22 }
 0x1d4   :  { %v346_v25 = vsel %vm345_vm9, %v340_v24, -inf }
 0x1d5   :  { %347 = vmax.xlane.f32.xlu2 %v346_v25 }
 0x1d9   :  { %v342_v27 = vpop.f32.mrf.mxu3 }
 0x1da   :  { %v343_v28 = vadd.f32 %v342_v27, %v1585_v26 }
 0x1dc   :  { %v349_v29 = vsel %vm345_vm9, %v343_v28, -inf }
 0x1dd   :  { %350 = vmax.xlane.f32.xlu2 %v349_v29 }
 0x1f5   :  { %404 = vrot.lane.b32.xlu2 %v274_v14, %s1372_s7 }
 0x1fd   :  { %400 = vrot.lane.b32.xlu2 %v244_v20, %s1372_s7 }
 0x205   :  { %559 = vrot.lane.b32.xlu2 %v271_v17, %s1373_s8 }
 0x20d   :  { %687 = vrot.lane.b32.xlu2 %v271_v17, %s1374_s9 }
 0x215   :  { %685 = vrot.lane.b32.xlu2 %v244_v20, %s1374_s9 }
 0x248   :  { %v348_v30 = vpop.xlane.xlu2 %347 }
 0x249   :  { %v352_v31 = vsub.f32 %v340_v24, %v348_v30 }
 0x24b   :  { %v354_v32 = vmul.f32 1.442695, %v352_v31 }
 0x24d   :  { %1170 = vpow2.f32 %v354_v32 }
 0x250   :  { %v351_v33 = vpop.xlane.xlu2 %350 }
 0x251   :  { %v353_v34 = vsub.f32 %v343_v28, %v351_v33 }
 0x253   :  { %v1171_v35 = vpop.eup %1170  ;;  %v356_v36 = vmul.f32 1.442695, %v353_v34 }
 0x254   :  { %v358_v37 = vsel %vm345_vm9, %v1171_v35, 0.0 }
 0x255   :  { %1172 = vpow2.f32 %v356_v36  ;;  %359 = vadd.xlane.f32.xlu0 %v358_v37 }
 0x258   :  { %v405_v38 = vpop.permute.xlu2 %404 }
 0x259   :  { %1090 = vmatpush.xpose.msk.msra.mxu1 %vm309_vm8, %v405_v38 }
 0x25b   :  { %v1173_v39 = vpop.eup %1172 }
 0x25c   :  { %v361_v40 = vsel %vm345_vm9, %v1173_v39, 0.0 }
 0x25d   :  { %362 = vadd.xlane.f32.xlu1 %v361_v40 }
 0x260   :  { %v401_v48 = vpop.permute.xlu2 %400 }
 0x268   :  { %v560_v51 = vpop.permute.xlu2 %559 }
 0x269   :  { %402 = vrot.lane.b32.xlu0 %v271_v17, %s1372_s7 }
 0x270   :  { %v688_v54 = vpop.permute.xlu2 %687 }
 0x271   :  { %561 = vrot.lane.b32.xlu0 %v274_v14, %s1373_s8 }
 0x276   :  { %398 = vrot.lane.b32.xlu1 %v243_v18, %s1372_s7 }
 0x278   :  { %v686_v61 = vpop.permute.xlu2 %685 }
 0x279   :  { %689 = vrot.lane.b32.xlu0 %v274_v14, %s1374_s9 }
 0x27e   :  { %555 = vrot.lane.b32.xlu1 %v243_v18, %s1373_s8 }
 0x281   :  { %683 = vrot.lane.b32.xlu0 %v243_v18, %s1374_s9 }
 0x286   :  { %557 = vrot.lane.b32.xlu1 %v244_v20, %s1373_s8 }
 0x2c8   :  { %v360_v41 = vpop.xlane.xlu0 %359 }
 0x2c9   :  { %1174 = vrcp.f32 %v360_v41 }
 0x2cf   :  { %v1175_v43 = vpop.eup %1174 }
 0x2d0   :  { %v363_v44 = vpop.xlane.xlu1 %362  ;;  %v366_v45 = vmul.f32 %v1175_v43, %v1171_v35 }
 0x2d1   :  { %1176 = vrcp.f32 %v363_v44 }
 0x2d2   :  { %1088 = vmatmul.msk.f32.vlgmr.msrb.gmra.mxu0 %vm345_vm9, %v366_v45 }
 0x2d7   :  { %v1177_v46 = vpop.eup %1176 }
 0x2d8   :  { %v367_v47 = vmul.f32 %v1177_v46, %v1173_v39 }
 0x2da   :  { %1089 = vmatmul.msk.f32.gmra.mxu0 %vm345_vm9, %v367_v47 }
 0x2db   :  { %v403_v49 = vpop.permute.xlu0 %402 }
 0x2dc   :  { %1091 = vmatpush.xpose.msk.msra.mxu1 %vm309_vm8, %v403_v49 }
 0x2e3   :  { %v562_v50 = vpop.permute.xlu0 %561 }
 0x2e4   :  { %1100 = vmatpush.xpose.msk.msrb.mxu1 %vm309_vm8, %v562_v50 }
 0x2e8   :  { %v399_v52 = vpop.permute.xlu1 %398  ;;  %1101 = vmatpush.xpose.msk.msrb.mxu1 %vm309_vm8, %v560_v51 }
 0x2e9   :  { %1092 = vmatmul.msk.f32.vlgmr.msra.gmra.mxu1 %vm309_vm8, %v399_v52 }
 0x2eb   :  { %v690_v53 = vpop.permute.xlu0 %689 }
 0x2ec   :  { %1108 = vmatpush.xpose.msk.msrb.mxu0 %vm309_vm8, %v690_v53 }
 0x2f0   :  { %1109 = vmatpush.xpose.msk.msrb.mxu0 %vm309_vm8, %v688_v54  ;;  %v556_v55 = vpop.permute.xlu1 %555 }
 0x2f1   :  { %1093 = vmatmul.msk.f32.gmra.mxu1 %vm309_vm8, %v401_v48 }
 0x2f3   :  { %v684_v59 = vpop.permute.xlu0 %683 }
 0x2f8   :  { %v558_v56 = vpop.permute.xlu1 %557 }
 0x2f9   :  { %1102 = vmatmul.msk.f32.vlgmr.msrb.gmra.mxu1 %vm309_vm8, %v556_v55 }
 0x301   :  { %1103 = vmatmul.msk.f32.gmra.mxu1 %vm309_vm8, %v558_v56 }
 0x34f   :  { %v391_v57 = vpop.f32.mrf.mxu0 }
 0x350   :  { %1098 = vmatmul.msk.f32.vlgmr.msra.gmra.mxu0 %vm309_vm8, %v391_v57 }
 0x357   :  { %v394_v58 = vpop.f32.mrf.mxu0 }
 0x358   :  { %1099 = vmatmul.msk.f32.gmra.mxu0 %vm309_vm8, %v394_v58 }
 0x360   :  { %1110 = vmatmul.msk.f32.vlgmr.msrb.gmra.mxu0 %vm309_vm8, %v684_v59 }
 0x366   :  { %v431_v60 = vpop.f32.mrf.mxu1 }
 0x367   :  { %v432_v62 = vadd.f32 %v431_v60, %v1581_v22 }
 0x368   :  { %1111 = vmatmul.msk.f32.gmra.mxu0 %vm309_vm8, %v686_v61 }
 0x369   :  { %v437_v63 = vsel %vm345_vm9, %v432_v62, -inf }
 0x36a   :  { %438 = vmax.xlane.f32.xlu1 %v437_v63 }
 0x36e   :  { %v434_v2 = vpop.f32.mrf.mxu1 }
 0x36f   :  { %v435_v3 = vadd.f32 %v434_v2, %v1585_v26 }
 0x371   :  { %v440_v4 = vsel %vm345_vm9, %v435_v3, -inf }
 0x372   :  { %441 = vmax.xlane.f32.xlu0 %v440_v4 }
 0x376   :  { %v588_v5 = vpop.f32.mrf.mxu1 }
 0x377   :  { %v589_v6 = vadd.f32 %v588_v5, %v1581_v22 }
 0x379   :  { %v594_v7 = vsel %vm345_vm9, %v589_v6, -inf }
 0x37a   :  { %595 = vmax.xlane.f32.xlu2 %v594_v7 }
 0x37e   :  { %v591_v8 = vpop.f32.mrf.mxu1 }
 0x37f   :  { %v592_v9 = vadd.f32 %v591_v8, %v1585_v26 }
 0x381   :  { %v597_v10 = vsel %vm345_vm9, %v592_v9, -inf }
 0x382   :  { %598 = vmax.xlane.f32.xlu1 %v597_v10 }
 0x3cd   :  { %v1627_v11 = vpop.f32.mrf.mxu0 }
 0x3d5   :  { %v1629_v12 = vpop.f32.mrf.mxu0 }
 0x3dd   :  { %v439_v13 = vpop.xlane.xlu1 %438  ;;  %v716_v14 = vpop.f32.mrf.mxu0 }
 0x3de   :  { %v443_v16 = vsub.f32 %v432_v62, %v439_v13  ;;  %v717_v17 = vadd.f32 %v716_v14, %v1581_v22 }
 0x3e0   :  { %v445_v18 = vmul.f32 1.442695, %v443_v16  ;;  %v722_v19 = vsel %vm345_vm9, %v717_v17, -inf  ;;  %v651_v16 = vld [vmem:[#allocation8 + $0x10] sm:$0xff] }
 0x3e1   :  { %723 = vmax.xlane.f32.xlu0 %v722_v19 }
 0x3e2   :  { %1178 = vpow2.f32 %v445_v18 }
 0x3e5   :  { %v442_v20 = vpop.xlane.xlu0 %441  ;;  %v719_v22 = vpop.f32.mrf.mxu0 }
 0x3e6   :  { %v444_v23 = vsub.f32 %v435_v3, %v442_v20  ;;  %v720_v33 = vadd.f32 %v719_v22, %v1585_v26 }
 0x3e8   :  { %v1179_v24 = vpop.eup %1178  ;;  %v447_v25 = vmul.f32 1.442695, %v444_v23  ;;  %v725_v38 = vsel %vm345_vm9, %v720_v33, -inf }
 0x3e9   :  { %v449_v27 = vsel %vm345_vm9, %v1179_v24, 0.0 }
 0x3ea   :  { %1180 = vpow2.f32 %v447_v25  ;;  %450 = vadd.xlane.f32.xlu1 %v449_v27  ;;  %v779_v27 = vld [vmem:[#allocation8 + $0x18] sm:$0xff] }
 0x3ed   :  { %v596_v28 = vpop.xlane.xlu2 %595 }
 0x3ee   :  { %v600_v29 = vsub.f32 %v589_v6, %v596_v28 }
 0x3f0   :  { %v1181_v30 = vpop.eup %1180  ;;  %v602_v31 = vmul.f32 1.442695, %v600_v29 }
 0x3f1   :  { %v452_v32 = vsel %vm345_vm9, %v1181_v30, 0.0 }
 0x3f2   :  { %1182 = vpow2.f32 %v602_v31  ;;  %453 = vadd.xlane.f32.xlu2 %v452_v32 }
 0x3f5   :  { %v599_v34 = vpop.xlane.xlu1 %598  ;;  %1140 = vrot.lane.b32.xlu0 %v1575_v15, %s1372_s7 }
 0x3f6   :  { %v601_v35 = vsub.f32 %v592_v9, %v599_v34  ;;  %v496_v9 = vld [vmem:[#allocation8 + $0x8] sm:$0xff] }
 0x3f7   :  { %518 = vmatpush.msrb.mxu3 %v496_v9 }
 0x3f8   :  { %v1183_v36 = vpop.eup %1182  ;;  %v604_v37 = vmul.f32 1.442695, %v601_v35 }
 0x3f9   :  { %v606_v39 = vsel %vm345_vm9, %v1183_v36, 0.0  ;;  %673 = vmatpush.msra.mxu3 %v651_v16 }
 0x3fa   :  { %1184 = vpow2.f32 %v604_v37  ;;  %726 = vmax.xlane.f32.xlu2 %v725_v38  ;;  %607 = vadd.xlane.f32.xlu1 %v606_v39 }
 0x400   :  { %v1185_v40 = vpop.eup %1184 }
 0x401   :  { %v609_v41 = vsel %vm345_vm9, %v1185_v40, 0.0 }
 0x402   :  { %610 = vadd.xlane.f32.xlu1 %v609_v41 }
 0x412   :  { %1145 = vrot.lane.b32.xlu2 %v1575_v15, %s1373_s8 }
 0x41b   :  { %1150 = vrot.lane.b32.xlu1 %v1575_v15, %s1374_s9  ;;  %s1376_s9 = smov [#allocation11]  }
 0x41c   :  { %s1061_s21 = sshll.u32 %s1376_s9, 4  ;;  %s1062_s21 = int_to_ptr.vmem [resolvable:$true] %s1061_s21 }
 0x454   :  { %v724_v26 = vpop.xlane.xlu0 %723 }
 0x455   :  { %v728_v42 = vsub.f32 %v717_v17, %v724_v26 }
 0x457   :  { %v730_v43 = vmul.f32 1.442695, %v728_v42 }
 0x459   :  { %1186 = vpow2.f32 %v730_v43 }
 0x45d   :  { %v451_v45 = vpop.xlane.xlu1 %450 }
 0x45e   :  { %1188 = vrcp.f32 %v451_v45 }
 0x45f   :  { %v1187_v44 = vpop.eup %1186 }
 0x460   :  { %v734_v46 = vsel %vm345_vm9, %v1187_v44, 0.0 }
 0x461   :  { %735 = vadd.xlane.f32.xlu0 %v734_v46 }
 0x464   :  { %v1189_v49 = vpop.eup %1188 }
 0x465   :  { %v454_v47 = vpop.xlane.xlu2 %453  ;;  %v457_v52 = vmul.f32 %v1189_v49, %v1179_v24  ;;  %v882_v49 = vld [vmem:[#allocation10 + $0x18] sm:$0xff] }
 0x466   :  { %1190 = vrcp.f32 %v454_v47 }
 0x467   :  { %v1141_v48 = vpop.permute.xlu0 %1140 }
 0x468   :  { %v1142_v50 = vunpack.i.l.bf16 %v1141_v48  ;;  %v1143_v51 = vunpack.i.h.bf16 %v1141_v48 }
 0x46a   :  { %487 = vmatpush.msrb.mxu2 %v1142_v50  ;;  %v880_v50 = vld [vmem:[#allocation10 + $0x8] sm:$0xff] }
 0x46c   :  { %488 = vmatpush.msrb.mxu2 %v1143_v51  ;;  %v1191_v55 = vpop.eup %1190 }
 0x46d   :  { %1094 = vmatmul.msk.f32.vlgmr.msrb.gmra.mxu2 %vm345_vm9, %v457_v52  ;;  %v608_v15 = vpop.xlane.xlu1 %607  ;;  %v727_v53 = vpop.xlane.xlu2 %726  ;;  %v458_v57 = vmul.f32 %v1191_v55, %v1181_v30 }
 0x46e   :  { %v729_v54 = vsub.f32 %v720_v33, %v727_v53  ;;  %1192 = vrcp.f32 %v608_v15 }
 0x470   :  { %v732_v56 = vmul.f32 1.442695, %v729_v54 }
 0x472   :  { %1194 = vpow2.f32 %v732_v56 }
 0x474   :  { %v1193_v60 = vpop.eup %1192 }
 0x475   :  { %1095 = vmatmul.msk.f32.gmra.mxu2 %vm345_vm9, %v458_v57  ;;  %v1146_v58 = vpop.permute.xlu2 %1145  ;;  %v611_v61 = vpop.xlane.xlu1 %610  ;;  %v614_v3 = vmul.f32 %v1193_v60, %v1183_v36  ;;  %v1159_v36 = vld [vmem:[%s1760_s11] ss:$0 sm:$0xff] }
 0x476   :  { %v1147_v59 = vunpack.i.l.bf16 %v1146_v58  ;;  %v1148_v63 = vunpack.i.h.bf16 %v1146_v58  ;;  %1196 = vrcp.f32 %v611_v61 }
 0x478   :  { %v1195_v62 = vpop.eup %1194  ;;  %642 = vmatpush.msra.mxu2 %v1147_v59 }
 0x479   :  { %v737_v2 = vsel %vm345_vm9, %v1195_v62, 0.0 }
 0x47a   :  { %738 = vadd.xlane.f32.xlu2 %v737_v2  ;;  %643 = vmatpush.msra.mxu2 %v1148_v63  ;;  %v1160_v2 = vld [vmem:[%s1761_s12] ss:$0 sm:$0xff] }
 0x47c   :  { %v1197_v4 = vpop.eup %1196  ;;  %801 = vmatpush.msrb.mxu2 %v779_v27 }
 0x47d   :  { %1104 = vmatmul.msk.f32.vlgmr.msra.gmra.mxu2 %vm345_vm9, %v614_v3  ;;  %v615_v5 = vmul.f32 %v1197_v4, %v1185_v40 }
 0x485   :  { %1105 = vmatmul.msk.f32.gmra.mxu2 %vm345_vm9, %v615_v5 }
 0x48d   :  { %v1151_v6 = vpop.permute.xlu1 %1150 }
 0x48e   :  { %v1152_v7 = vunpack.i.l.bf16 %v1151_v6  ;;  %v1153_v8 = vunpack.i.h.bf16 %v1151_v6 }
 0x490   :  { %770 = vmatpush.msra.mxu1 %v1152_v7 }
 0x492   :  { %771 = vmatpush.msra.mxu1 %v1153_v8  ;;  %v1161_v8 = vld [vmem:[%s1762_s13] ss:$0 sm:$0xff] }
 0x4d4   :  { %v736_v10 = vpop.xlane.xlu0 %735 }
 0x4d5   :  { %1198 = vrcp.f32 %v736_v10 }
 0x4db   :  { %v1199_v13 = vpop.eup %1198 }
 0x4dc   :  { %v742_v14 = vmul.f32 %v1199_v13, %v1187_v44 }
 0x4de   :  { %1112 = vmatmul.msk.f32.vlgmr.msra.gmra.mxu1 %vm345_vm9, %v742_v14 }
 0x4ed   :  { %v739_v17 = vpop.xlane.xlu2 %738 }
 0x4ee   :  { %1200 = vrcp.f32 %v739_v17 }
 0x4f0   :  { %v490_v18 = vpop.f32.mrf.mxu2 }
 0x4f1   :  { %1096 = vmatmul.msk.f32.vlgmr.msrb.gmra.mxu3 %vm309_vm8, %v490_v18 }
 0x4f2   :  { %905 = vmatpush.msrb.mxu3 %v882_v49 }
 0x4f4   :  { %v1201_v19 = vpop.eup %1200 }
 0x4f5   :  { %v743_v20 = vmul.f32 %v1201_v19, %v1195_v62 }
 0x4f7   :  { %1113 = vmatmul.msk.f32.gmra.mxu1 %vm345_vm9, %v743_v20 }
 0x4f8   :  { %v493_v23 = vpop.f32.mrf.mxu2 }
 0x4f9   :  { %1097 = vmatmul.msk.f32.gmra.mxu3 %vm309_vm8, %v493_v23 }
 0x500   :  { %v645_v24 = vpop.f32.mrf.mxu2 }
 0x501   :  { %1106 = vmatmul.msk.f32.vlgmr.msra.gmra.mxu3 %vm309_vm8, %v645_v24 }
 0x508   :  { %v648_v25 = vpop.f32.mrf.mxu2 }
 0x509   :  { %1107 = vmatmul.msk.f32.gmra.mxu3 %vm309_vm8, %v648_v25 }
 0x55b   :  { %v773_v28 = vpop.f32.mrf.mxu1 }
 0x55c   :  { %1114 = vmatmul.msk.f32.vlgmr.msrb.gmra.mxu2 %vm309_vm8, %v773_v28 }
 0x574   :  { %v776_v29 = vpop.f32.mrf.mxu1  ;;  %v520_v30 = vpop.f32.mrf.mxu3 }
 0x575   :  { %1115 = vmatmul.msk.f32.gmra.mxu2 %vm309_vm8, %v776_v29  ;;  %v550_v22 = vadd.f32 %v1627_v11, %v520_v30 }
 0x57c   :  { %v523_v31 = vpop.f32.mrf.mxu3 }
 0x57d   :  { %v553_v26 = vadd.f32 %v1629_v12, %v523_v31  ;;  %v881_v12 = vld [vmem:[#allocation10 + $0x10] sm:$0xff]  ;;  %v1375_v31 = vmov 1.4142135  }
 0x57e   :  { %906 = vmatpush.msrb.mxu3 %v881_v12 }
 0x580   :  { %907 = vmatpush.msrb.mxu3 %v880_v50  ;;  %v1015_v50 = vld [vmem:[%s1765_s16 + $0x20] sm:$0xff] }
 0x584   :  { %v675_v32 = vpop.f32.mrf.mxu3 }
 0x585   :  { %v681_v33 = vadd.f32 %v675_v32, %v550_v22 }
 0x58c   :  { %v678_v41 = vpop.f32.mrf.mxu3 }
 0x58d   :  { %v682_v42 = vadd.f32 %v678_v41, %v553_v26 }
 0x5df   :  { %v803_v34 = vpop.f32.mrf.mxu2 }
 0x5e0   :  { %v809_v35 = vadd.f32 %v803_v34, %v681_v33 }
 0x5e2   :  { %v811_v37 = vadd.f32 %v809_v35, %v1501_v1 }
 0x5e4   :  { %v1664_v38 = vadd.f32 %v1159_v36, %v811_v37 }
 0x5e6   :  { %v821_v39 = vsel %vm140_vm0, %v1664_v38, 0.0  ;;  %v829_v40 = vmul.f32 %v1664_v38, %v1664_v38 }
 0x5e7   :  { %822 = vadd.xlane.f32.xlu1 %v821_v39 }
 0x5e8   :  { %v831_v11 = vsel %vm140_vm0, %v829_v40, 0.0 }
 0x5e9   :  { %832 = vadd.xlane.f32.xlu0 %v831_v11 }
 0x5f8   :  { %v806_v43 = vpop.f32.mrf.mxu2 }
 0x5f9   :  { %v810_v44 = vadd.f32 %v806_v43, %v682_v42  ;;  %v1018_v42 = vld [vmem:[%s1765_s16 + $0x38] sm:$0xff] }
 0x5fa   :  { %1038 = vmatpush.msra.mxu0 %v1018_v42 }
 0x5fb   :  { %v812_v1 = vadd.f32 %v810_v44, %v1499_v0  ;;  %v879_v0 = vld [vmem:[#allocation10] sm:$0xff] }
 0x5fc   :  { %908 = vmatpush.msrb.mxu3 %v879_v0 }
 0x5fd   :  { %v1673_v45 = vadd.f32 %v1159_v36, %v812_v1  ;;  %v1162_v36 = vld [vmem:[%s1764_s15] ss:$0 sm:$0xff]  ;;  %v1017_v1 = vld [vmem:[%s1765_s16 + $0x30] sm:$0xff] }
 0x5fe   :  { %1039 = vmatpush.msra.mxu0 %v1017_v1 }
 0x5ff   :  { %v824_v46 = vsel %vm140_vm0, %v1673_v45, 0.0  ;;  %v830_v47 = vmul.f32 %v1673_v45, %v1673_v45 }
 0x600   :  { %825 = vadd.xlane.f32.xlu0 %v824_v46 }
 0x601   :  { %v834_v48 = vsel %vm140_vm0, %v830_v47, 0.0 }
 0x602   :  { %835 = vadd.xlane.f32.xlu2 %v834_v48  ;;  %v1016_v48 = vld [vmem:[%s1765_s16 + $0x28] sm:$0xff] }
 0x603   :  { %1040 = vmatpush.msra.mxu0 %v1016_v48 }
 0x605   :  { %1041 = vmatpush.msra.mxu0 %v1015_v50 }
 0x65a   :  { %v823_v51 = vpop.xlane.xlu1 %822 }
 0x65b   :  { %v827_v52 = vmul.f32 %v823_v51, %v1528_v21 }
 0x65c   :  { %v833_v15 = vpop.xlane.xlu0 %832 }
 0x65d   :  { %v839_v53 = vmul.f32 %v827_v52, %v827_v52  ;;  %v837_v54 = vmul.f32 %v833_v15, %v1528_v21  ;;  %v843_v63 = vsub.f32 %v1664_v38, %v827_v52  ;;  %v1014_v52 = vld [vmem:[%s1765_s16 + $0x18] sm:$0xff] }
 0x65e   :  { %1042 = vmatpush.msra.mxu0 %v1014_v52 }
 0x65f   :  { %v841_v55 = vsub.f32 %v837_v54, %v839_v53  ;;  %v1013_v53 = vld [vmem:[%s1765_s16 + $0x10] sm:$0xff] }
 0x660   :  { %1043 = vmatpush.msra.mxu0 %v1013_v53 }
 0x661   :  { %v845_v56 = vadd.f32 1e-05, %v841_v55 }
 0x663   :  { %1202 = vrsqrt.f32 %v845_v56  ;;  %vm853_vm11 = vweird.f32 %v845_v56 }
 0x669   :  { %v1203_v57 = vpop.eup %1202 }
 0x66a   :  { %v848_v58 = vmul.f32 %v1203_v57, %v845_v56  ;;  %vm854_vm10 = vweird.f32 %v1203_v57  ;;  %v1012_v56 = vld [vmem:[%s1765_s16 + $0x8] sm:$0xff] }
 0x66b   :  { %vm855_vm12 = vmor %vm853_vm11, %vm854_vm10  ;;  %1044 = vmatpush.msra.mxu0 %v1012_v56 }
 0x66c   :  { %v849_v59 = vmul.f32 %v1203_v57, %v848_v58  ;;  %v1011_v58 = vld [vmem:[%s1765_s16] sm:$0xff] }
 0x66d   :  { %1045 = vmatpush.msra.mxu0 %v1011_v58 }
 0x66e   :  { %v850_v60 = vmul.f32 0.5, %v849_v59 }
 0x670   :  { %v851_v61 = vsub.f32 1.5, %v850_v60 }
 0x672   :  { %v852_v62 = vmul.f32 %v1203_v57, %v851_v61 }
 0x673   :  { %v826_v3 = vpop.xlane.xlu0 %825 }
 0x674   :  { %v856_v4 = vsel %vm855_vm12, %v1203_v57, %v852_v62  ;;  %v828_v5 = vmul.f32 %v826_v3, %v1528_v21 }
 0x675   :  { %v867_v6 = vmul.f32 %v856_v4, %v843_v63  ;;  %v836_v7 = vpop.xlane.xlu2 %835 }
 0x676   :  { %v840_v9 = vmul.f32 %v828_v5, %v828_v5  ;;  %v838_v10 = vmul.f32 %v836_v7, %v1528_v21  ;;  %v844_v27 = vsub.f32 %v1673_v45, %v828_v5 }
 0x677   :  { %v872_v13 = vmul.f32 %v1160_v2, %v867_v6 }
 0x678   :  { %v842_v14 = vsub.f32 %v838_v10, %v840_v9 }
 0x679   :  { %v877_v16 = vadd.f32 %v1161_v8, %v872_v13 }
 0x67a   :  { %v846_v17 = vadd.f32 1e-05, %v842_v14 }
 0x67b   :  { %1116 = vmatmul.msk.f32.vlgmr.msrb.gmra.mxu3 %vm140_vm0, %v877_v16 }
 0x67c   :  { %1204 = vrsqrt.f32 %v846_v17  ;;  %vm863_vm14 = vweird.f32 %v846_v17 }
 0x67d   :  { %1206 = vrcp.f32 %v1375_v31 }
 0x682   :  { %v1205_v18 = vpop.eup %1204 }
 0x683   :  { %v858_v19 = vmul.f32 %v1205_v18, %v846_v17  ;;  %vm864_vm13 = vweird.f32 %v1205_v18  ;;  %v1207_v32 = vpop.eup %1206 }
 0x684   :  { %vm865_vm15 = vmor %vm863_vm14, %vm864_vm13  ;;  %v919_v22 = vmul.f32 1.4142135, %v1207_v32  ;;  %vm923_vm1 = vweird.f32 %v1207_v32 }
 0x685   :  { %v859_v20 = vmul.f32 %v1205_v18, %v858_v19 }
 0x686   :  { %v920_v33 = vsub.f32 1.0, %v919_v22 }
 0x687   :  { %v860_v23 = vmul.f32 0.5, %v859_v20 }
 0x688   :  { %v921_v34 = vmul.f32 %v1207_v32, %v920_v33 }
 0x689   :  { %v861_v24 = vsub.f32 1.5, %v860_v23 }
 0x68a   :  { %v922_v35 = vadd.f32 %v1207_v32, %v921_v34 }
 0x68b   :  { %v862_v25 = vmul.f32 %v1205_v18, %v861_v24 }
 0x68c   :  { %v924_v39 = vsel %vm923_vm1, %v1207_v32, %v922_v35 }
 0x68d   :  { %v866_v28 = vsel %vm865_vm15, %v1205_v18, %v862_v25 }
 0x68e   :  { %v868_v21 = vmul.f32 %v866_v28, %v844_v27 }
 0x690   :  { %v873_v29 = vmul.f32 %v1160_v2, %v868_v21 }
 0x692   :  { %v878_v30 = vadd.f32 %v1161_v8, %v873_v29 }
 0x694   :  { %1117 = vmatmul.msk.f32.gmra.mxu3 %vm140_vm0, %v878_v30 }
 0x6fe   :  { %v910_v37 = vpop.f32.mrf.mxu3 }
 0x6ff   :  { %v1697_v40 = vadd.f32 %v1162_v36, %v910_v37 }
 0x701   :  { %v1700_v11 = vmul.f32 %v924_v39, %v1697_v40  ;;  %v916_v42 = vmul.f32 0.5, %v1697_v40 }
 0x703   :  { %v927_v41 = vmul.f32 %v1700_v11, %v1700_v11 }
 0x705   :  { %v928_v26 = vmin.f32 %v927_v41, 16.0 }
 0x707   :  { %v929_v43 = vmul.f32 2.1237322e-06, %v928_v26  ;;  %v940_v44 = vmul.f32 3.8918573e-05, %v928_v26 }
 0x709   :  { %v930_v46 = vadd.f32 0.00028619796, %v929_v43  ;;  %v941_v47 = vadd.f32 0.001143296, %v940_v44 }
 0x70b   :  { %v931_v49 = vmul.f32 %v930_v46, %v928_v26  ;;  %v942_v12 = vmul.f32 %v941_v47, %v928_v26 }
 0x70d   :  { %v932_v51 = vadd.f32 0.0036580483, %v931_v49  ;;  %v943_v0 = vadd.f32 0.014752088, %v942_v12 }
 0x70f   :  { %v944_v15 = vmul.f32 %v943_v0, %v928_v26  ;;  %v933_v54 = vmul.f32 %v932_v51, %v928_v26 }
 0x711   :  { %v945_v55 = vadd.f32 0.112945676, %v944_v15  ;;  %v934_v59 = vadd.f32 0.05243302, %v933_v54 }
 0x713   :  { %v946_v57 = vmul.f32 %v945_v55, %v928_v26  ;;  %v935_v2 = vmul.f32 %v934_v59, %v928_v26 }
 0x715   :  { %v947_v60 = vadd.f32 0.4994258, %v946_v57  ;;  %v936_v6 = vadd.f32 0.18741608, %v935_v2 }
 0x717   :  { %v948_v61 = vmul.f32 %v947_v60, %v928_v26  ;;  %v913_v62 = vpop.f32.mrf.mxu3  ;;  %v937_v13 = vmul.f32 %v936_v6, %v928_v26 }
 0x718   :  { %v1728_v63 = vadd.f32 %v1162_v36, %v913_v62  ;;  %v1163_v62 = vld [vmem:[%s1766_s17] ss:$0 sm:$0xff] }
 0x719   :  { %v949_v3 = vadd.f32 1.0, %v948_v61  ;;  %v938_v23 = vadd.f32 1.1283791, %v937_v13 }
 0x71a   :  { %v926_v4 = vmul.f32 %v924_v39, %v1728_v63  ;;  %v917_v59 = vmul.f32 0.5, %v1728_v63 }
 0x71b   :  { %1208 = vrcp.f32 %v949_v3  ;;  %v961_v24 = vand.u32 2147483648, %v949_v3  ;;  %v959_v27 = vand.u32 2147483647, %v949_v3  ;;  %vm955_vm3 = vweird.f32 %v949_v3 }
 0x71c   :  { %v967_v5 = vmul.f32 %v926_v4, %v926_v4  ;;  %v939_v32 = vmul.f32 %v938_v23, %v1700_v11 }
 0x71d   :  { %v962_v31 = vor.u32 1.1754944e-38, %v961_v24  ;;  %vm960_vm5 = vcmp.eq.f32.partialorder %v959_v27, 8.507059e+37 }
 0x71e   :  { %v968_v7 = vmin.f32 %v967_v5, 16.0 }
 0x720   :  { %v969_v8 = vmul.f32 2.1237322e-06, %v968_v7  ;;  %v980_v9 = vmul.f32 3.8918573e-05, %v968_v7 }
 0x721   :  { %v1209_v10 = vpop.eup %1208 }
 0x722   :  { %v951_v14 = vmul.f32 %v1209_v10, %v949_v3  ;;  %v970_v16 = vadd.f32 0.00028619796, %v969_v8  ;;  %v981_v17 = vadd.f32 0.001143296, %v980_v9  ;;  %vm956_vm2 = vweird.f32 %v1209_v10 }
 0x723   :  { %vm957_vm4 = vmor %vm955_vm3, %vm956_vm2 }
 0x724   :  { %v952_v18 = vsub.f32 1.0, %v951_v14  ;;  %v971_v19 = vmul.f32 %v970_v16, %v968_v7  ;;  %v982_v20 = vmul.f32 %v981_v17, %v968_v7 }
 0x726   :  { %v953_v25 = vmul.f32 %v1209_v10, %v952_v18  ;;  %v983_v28 = vadd.f32 0.014752088, %v982_v20  ;;  %v972_v21 = vadd.f32 0.0036580483, %v971_v19 }
 0x728   :  { %v954_v29 = vadd.f32 %v1209_v10, %v953_v25  ;;  %v984_v30 = vmul.f32 %v983_v28, %v968_v7  ;;  %v973_v35 = vmul.f32 %v972_v21, %v968_v7 }
 0x72a   :  { %v958_v22 = vsel %vm957_vm4, %v1209_v10, %v954_v29  ;;  %v985_v33 = vadd.f32 0.112945676, %v984_v30  ;;  %v974_v26 = vadd.f32 0.05243302, %v973_v35 }
 0x72b   :  { %v963_v34 = vsel %vm960_vm5, %v962_v31, %v958_v22 }
 0x72c   :  { %v964_v36 = vmul.f32 %v963_v34, %v939_v32  ;;  %v986_v37 = vmul.f32 %v985_v33, %v968_v7  ;;  %v975_v47 = vmul.f32 %v974_v26, %v968_v7 }
 0x72e   :  { %v1118_v39 = vclamps-f32 %v964_v36, 1.0  ;;  %v987_v41 = vadd.f32 0.4994258, %v986_v37  ;;  %v976_v11 = vadd.f32 0.18741608, %v975_v47 }
 0x730   :  { %v1007_v43 = vadd.f32 1.0, %v1118_v39  ;;  %v988_v44 = vmul.f32 %v987_v41, %v968_v7  ;;  %v977_v49 = vmul.f32 %v976_v11, %v968_v7 }
 0x732   :  { %v1009_v1 = vmul.f32 %v1007_v43, %v916_v42  ;;  %v989_v46 = vadd.f32 1.0, %v988_v44  ;;  %v978_v0 = vadd.f32 1.1283791, %v977_v49 }
 0x734   :  { %1210 = vrcp.f32 %v989_v46  ;;  %1120 = vmatmul.msk.f32.vlgmr.msra.gmra.mxu0 %vm1023_vm6, %v1009_v1  ;;  %v1001_v51 = vand.u32 2147483648, %v989_v46  ;;  %v999_v15 = vand.u32 2147483647, %v989_v46  ;;  %vm995_vm8 = vweird.f32 %v989_v46 }
 0x735   :  { %v979_v54 = vmul.f32 %v978_v0, %v926_v4 }
 0x736   :  { %v1002_v53 = vor.u32 1.1754944e-38, %v1001_v51  ;;  %vm1000_vm10 = vcmp.eq.f32.partialorder %v999_v15, 8.507059e+37 }
 0x73a   :  { %v1211_v48 = vpop.eup %1210 }
 0x73b   :  { %v991_v12 = vmul.f32 %v1211_v48, %v989_v46  ;;  %vm996_vm7 = vweird.f32 %v1211_v48 }
 0x73c   :  { %vm997_vm9 = vmor %vm995_vm8, %vm996_vm7 }
 0x73d   :  { %v992_v50 = vsub.f32 1.0, %v991_v12 }
 0x73f   :  { %v993_v52 = vmul.f32 %v1211_v48, %v992_v50 }
 0x741   :  { %v994_v40 = vadd.f32 %v1211_v48, %v993_v52 }
 0x743   :  { %v998_v55 = vsel %vm997_vm9, %v1211_v48, %v994_v40 }
 0x744   :  { %v1003_v56 = vsel %vm1000_vm10, %v1002_v53, %v998_v55 }
 0x745   :  { %v1004_v57 = vmul.f32 %v1003_v56, %v979_v54 }
 0x747   :  { %v1119_v58 = vclamps-f32 %v1004_v57, 1.0 }
 0x749   :  { %v1008_v60 = vadd.f32 1.0, %v1119_v58 }
 0x74b   :  { %v1010_v61 = vmul.f32 %v1008_v60, %v917_v59 }
 0x74d   :  { %1121 = vmatmul.msk.f32.gmra.mxu0 %vm1023_vm6, %v1010_v61 }
 0x7b1   :  { %v1047_v2 = vpop.f32.mrf.mxu0 }
 0x7b2   :  { %v1048_v3 = vadd.f32 %v1163_v62, %v1047_v2 }
 0x7b4   :  { %v1053_v5 = vadd.f32 %v1048_v3, %v1664_v38 }
 0x7b6   :  { %1055 = vst.msk [vmem:[#allocation11] sm:$0xff] %vm140_vm0, %v1053_v5 }
 0x7ca   :  { %v1050_v4 = vpop.f32.mrf.mxu0 }
 0x7cb   :  { %v1051_v63 = vadd.f32 %v1163_v62, %v1050_v4 }
 0x7cd   :  { %v1054_v6 = vadd.f32 %v1051_v63, %v1673_v45 }
 0x7cf   :  { %1056 = vst.msk [vmem:[#allocation11 + $0x8] sm:$0xff] %vm140_vm0, %v1054_v6 }
 0x7d0   :  { %1069 = dma.vmem_to_hbm [thread:$0]  %s1062_s21, 256, %s1064_s3, [#allocation4], %s1365_s22, %s1365_s22, %s1366_s2  }
 0x7d1   :  { %1362 = dma.done.wait [#allocation4], 256  }
 0x7d2   :  { %1363 = vsyncadd [#allocation4], 4294967040 }
 0x7d3   :  { %1074 = vsyncpa [#allocation3], 1 }
 0x7d4   :  { %1075 = vsyncpa [#allocation6], 1 }
 0x7d5   :  { %1076 = vsyncpa [#allocation9], 1 }
 0x7d6   :  { %1077 = vsyncpa [#allocation4], 1 }

</bundles_post_ra>
